<compile_context>
chip_gen: v5e
topology: v5e:2x2
jax: 0.10.0
libtpu: 0.0.40
codegen_flags: <defaults>
</compile_context>

<pallas_src>
import functools

import jax
import jax.numpy as jnp
from jax import lax
from jax.experimental import pallas as pl
from jax.experimental.pallas import tpu as pltpu


# ----------------------------- kernel body ----------------------------------
def _block_kernel(x_ref,
                  n1g_ref, n1b_ref,
                  wqkv_ref, wp_ref, bp_ref,
                  n2g_ref, n2b_ref,
                  w1_ref, b1_ref,
                  w2_ref, b2_ref,
                  wl_ref, bl_ref,
                  o_ref,
                  *, num_heads, eps):
    Bt, N, C = x_ref.shape
    hd = C // num_heads
    R = Bt * N

    # Flatten the batch tile into rows: (Bt, N, C) -> (Bt*N, C).  N is a multiple
    # of 8 (asserted in the wrapper) so this is a layout no-op.
    x2d = x_ref[...].reshape(R, C)

    def layer_norm(v, g, b):
        mu = jnp.mean(v, axis=-1, keepdims=True)
        var = jnp.mean((v - mu) ** 2, axis=-1, keepdims=True)
        return (v - mu) * lax.rsqrt(var + eps) * g + b

    # ---- Attention branch ---------------------------------------------------
    xn = layer_norm(x2d, n1g_ref[...], n1b_ref[...])            # (R, C)

    # Fused QKV: ONE slab-wide MXU matmul (contraction = C).  Column layout is
    # [Q | K | V]; within each block, head h owns columns h*hd:(h+1)*hd (PyTorch
    # ordering).  The attention scale is already folded into the Q columns.
    qkv = jnp.dot(xn, wqkv_ref[...], preferred_element_type=jnp.float32)  # (R, 3C)

    # Per-head attention (static head loop), batched over the batch tile.
    # Accumulating each head's projected contribution == concat(heads) @ Wp.
    attn_acc = jnp.zeros((R, C), jnp.float32)
    for h in range(num_heads):
        q = qkv[:, h * hd:(h + 1) * hd].reshape(Bt, N, hd)               # (Bt,N,hd)
        k = qkv[:, C + h * hd:C + (h + 1) * hd].reshape(Bt, N, hd)
        v = qkv[:, 2 * C + h * hd:2 * C + (h + 1) * hd].reshape(Bt, N, hd)

        s = jnp.einsum('bnd,bmd->bnm', q, k,
                       preferred_element_type=jnp.float32)               # (Bt,N,N)
        s = s - jnp.max(s, axis=-1, keepdims=True)
        p = jnp.exp(s)
        p = p * pl.reciprocal(jnp.sum(p, axis=-1, keepdims=True), approx=True)

        o = jnp.einsum('bnm,bmd->bnd', p, v,
                       preferred_element_type=jnp.float32)               # (Bt,N,hd)
        attn_acc = attn_acc + jnp.dot(o.reshape(R, hd), wp_ref[h],
                                      preferred_element_type=jnp.float32)  # (R, C)

    x1 = x2d + attn_acc + bp_ref[...]                            # residual 1 (+ proj bias)

    # ---- MLP branch ---------------------------------------------------------
    xn2 = layer_norm(x1, n2g_ref[...], n2b_ref[...])
    h1 = jnp.dot(xn2, w1_ref[...], preferred_element_type=jnp.float32) + b1_ref[...]
    h1 = jnp.maximum(h1, 0.0)                                    # ReLU (act_layer=nn.ReLU)
    x2 = x1 + jnp.dot(h1, w2_ref[...], preferred_element_type=jnp.float32) + b2_ref[...]

    # ---- output linear (dim != output_dim), lane-dense (padded) -------------
    out = jnp.dot(x2, wl_ref[...], preferred_element_type=jnp.float32) + bl_ref[...]
    o_ref[...] = out.reshape(Bt, N, -1).astype(o_ref.dtype)


# ----------------------------- wrapper ---------------------------------------
def _pick_batch_tile(B, max_bt=8):
    bt = min(B, max_bt)
    while B % bt:
        bt -= 1
    return bt


def block_forward(x, params, *, num_heads, batch_tile=None):
    """x: (B, N, C) float32.  params: dict of canonical weights (see init in main)."""
    B, N, C = x.shape
    assert C % num_heads == 0
    hd = C // num_heads
    assert N % 8 == 0, "token count must be a multiple of 8 (f32 sublane tile)"
    scale = hd ** (-0.5)
    Ch = params["w1"].shape[1]
    Cout = params["wl"].shape[1]
    Cout_p = max(128, ((Cout + 127) // 128) * 128)   # lane-dense output width

    Bt = batch_tile or _pick_batch_tile(B)
    assert B % Bt == 0
    grid = (B // Bt,)

    # ---- host-side weight prepacking (plain JAX, outside the kernel) --------
    # Fused QKV weight (C, 3C): [Q*scale | K | V]; per-head columns are already
    # contiguous within each block (matches the PyTorch reshape ordering).
    wqkv = jnp.concatenate([params["wq"] * scale, params["wk"], params["wv"]],
                           axis=1)                               # (C, 3C)
    # Per-head rows of the attention output projection: (H, hd, C).
    wp_h = params["wp"].reshape(num_heads, hd, C)

    # Pad the final linear to a 128-multiple so the output store is unmasked.
    pad = Cout_p - Cout
    wl_p = jnp.pad(params["wl"], ((0, 0), (0, pad))) if pad else params["wl"]
    bl_p = jnp.pad(params["bl"], ((0, 0), (0, pad))) if pad else params["bl"]

    kernel = functools.partial(_block_kernel, num_heads=num_heads, eps=1e-5)

    def full(shape):
        rank = len(shape)
        return pl.BlockSpec(shape, lambda i, _r=rank: (0,) * _r)

    in_specs = [
        pl.BlockSpec((Bt, N, C), lambda i: (i, 0, 0)),     # x (batch-tiled)
        full((1, C)), full((1, C)),                        # norm1 gamma/beta
        full((C, 3 * C)),                                  # fused QKV weight
        full((num_heads, hd, C)),                          # per-head proj weight
        full((1, C)),                                      # proj bias
        full((1, C)), full((1, C)),                        # norm2 gamma/beta
        full((C, Ch)), full((1, Ch)),                      # fc1 w, b
        full((Ch, C)), full((1, C)),                       # fc2 w, b
        full((C, Cout_p)), full((1, Cout_p)),              # final linear w, b (padded)
    ]

    out = pl.pallas_call(
        kernel,
        out_shape=jax.ShapeDtypeStruct((B, N, Cout_p), jnp.float32),
        grid_spec=pltpu.PrefetchScalarGridSpec(
            num_scalar_prefetch=0,
            grid=grid,
            in_specs=in_specs,
            out_specs=pl.BlockSpec((Bt, N, Cout_p), lambda i: (i, 0, 0)),
        ),
        compiler_params=pltpu.CompilerParams(
            dimension_semantics=("parallel",)),              # batch tiles are independent
    )(x,
      params["n1g"], params["n1b"],
      wqkv, wp_h, params["bp"],
      params["n2g"], params["n2b"],
      params["w1"], params["b1"],
      params["w2"], params["b2"],
      wl_p, bl_p)

    return out[..., :Cout] if pad else out


# ----------------------------- pure-JAX reference ----------------------------
def block_reference(x, params, *, num_heads):
    B, N, C = x.shape
    hd = C // num_heads
    scale = hd ** (-0.5)

    def ln(v, g, b):
        mu = v.mean(-1, keepdims=True)
        var = ((v - mu) ** 2).mean(-1, keepdims=True)
        return (v - mu) / jnp.sqrt(var + 1e-5) * g + b

    xn = ln(x, params["n1g"], params["n1b"])
    q = xn @ params["wq"]; k = xn @ params["wk"]; v = xn @ params["wv"]
    q = q.reshape(B, N, num_heads, hd).transpose(0, 2, 1, 3)
    k = k.reshape(B, N, num_heads, hd).transpose(0, 2, 1, 3)
    v = v.reshape(B, N, num_heads, hd).transpose(0, 2, 1, 3)
    attn = jnp.einsum("bhnd,bhmd->bhnm", q, k) * scale
    attn = jax.nn.softmax(attn, axis=-1)
    ao = jnp.einsum("bhnm,bhmd->bhnd", attn, v).transpose(0, 2, 1, 3).reshape(B, N, C)
    x1 = x + (ao @ params["wp"] + params["bp"])
    xn2 = ln(x1, params["n2g"], params["n2b"])
    h = jnp.maximum(xn2 @ params["w1"] + params["b1"], 0.0)
    x2 = x1 + (h @ params["w2"] + params["b2"])
    return x2 @ params["wl"] + params["bl"]


# ----------------------------- main -------------------------------------------
if __name__ == "__main__":
    B, N, C = 2, 8, 32          # batch, tokens, dim
    num_heads = 8
    mlp_ratio = 4.0
    Ch = int(C * mlp_ratio)     # 128
    Cout = 64                   # output_dim != dim -> exercises the final Linear

    key = jax.random.PRNGKey(0)
    ks = jax.random.split(key, 12)

    def rnd(k, shape, s=0.05):
        return jax.random.normal(k, shape, dtype=jnp.float32) * s

    # qkv weight in PyTorch is (3C, C); rows [0:C]=q, [C:2C]=k, [2C:3C]=v.
    # Here each piece is stored already transposed to (in_features, out_features).
    params = {
        "n1g": jnp.ones((1, C), jnp.float32),
        "n1b": jnp.zeros((1, C), jnp.float32),
        "wq": rnd(ks[0], (C, C)),
        "wk": rnd(ks[1], (C, C)),
        "wv": rnd(ks[2], (C, C)),
        "wp": rnd(ks[3], (C, C)),
        "bp": rnd(ks[4], (1, C)),
        "n2g": jnp.ones((1, C), jnp.float32),
        "n2b": jnp.zeros((1, C), jnp.float32),
        "w1": rnd(ks[5], (C, Ch)),
        "b1": rnd(ks[6], (1, Ch)),
        "w2": rnd(ks[7], (Ch, C)),
        "b2": rnd(ks[8], (1, C)),
        "wl": rnd(ks[9], (C, Cout)),
        "bl": rnd(ks[10], (1, Cout)),
    }

    x = jax.random.normal(ks[11], (B, N, C), dtype=jnp.float32)

    out = block_forward(x, params, num_heads=num_heads)
    out = jax.block_until_ready(out)

    ref = block_reference(x, params, num_heads=num_heads)
    assert out.shape == (B, N, Cout)
    # Tolerance 1e-3: approx=True softmax reciprocal adds a small (~1e-3 relative)
    # denominator error; everything else is exact f32 math.
    assert jnp.allclose(out, ref, rtol=1e-3, atol=1e-3), "mismatch vs reference"

    print("KERNEL_OK")
</pallas_src>

<mosaic_0001>
module attributes {stable_mosaic.version = 11 : i64} {
  func.func @_block_kernel(%arg0: i32, %arg1: memref<2x8x32xf32, #tpu.memory_space<vmem>>, %arg2: memref<1x32xf32, #tpu.memory_space<vmem>>, %arg3: memref<1x32xf32, #tpu.memory_space<vmem>>, %arg4: memref<32x96xf32, #tpu.memory_space<vmem>>, %arg5: memref<8x4x32xf32, #tpu.memory_space<vmem>>, %arg6: memref<1x32xf32, #tpu.memory_space<vmem>>, %arg7: memref<1x32xf32, #tpu.memory_space<vmem>>, %arg8: memref<1x32xf32, #tpu.memory_space<vmem>>, %arg9: memref<32x128xf32, #tpu.memory_space<vmem>>, %arg10: memref<1x128xf32, #tpu.memory_space<vmem>>, %arg11: memref<128x32xf32, #tpu.memory_space<vmem>>, %arg12: memref<1x32xf32, #tpu.memory_space<vmem>>, %arg13: memref<32x128xf32, #tpu.memory_space<vmem>>, %arg14: memref<1x128xf32, #tpu.memory_space<vmem>>, %arg15: memref<2x8x128xf32, #tpu.memory_space<vmem>>) attributes {dimension_semantics = [#tpu.dimension_semantics<parallel>], iteration_bounds = array<i64: 1>, scalar_prefetch = 0 : i64, scratch_operands = 0 : i64, tpu.core_type = #tpu.core_type<tc>, window_params = [{transform_indices = @transform_0, window_bounds = array<i64: 2, 8, 32>}, {pipeline_mode = #tpu.pipeline_mode<synchronous>, transform_indices = @transform_1, window_bounds = array<i64: 1, 32>}, {pipeline_mode = #tpu.pipeline_mode<synchronous>, transform_indices = @transform_2, window_bounds = array<i64: 1, 32>}, {pipeline_mode = #tpu.pipeline_mode<synchronous>, transform_indices = @transform_3, window_bounds = array<i64: 32, 96>}, {pipeline_mode = #tpu.pipeline_mode<synchronous>, transform_indices = @transform_4, window_bounds = array<i64: 8, 4, 32>}, {pipeline_mode = #tpu.pipeline_mode<synchronous>, transform_indices = @transform_5, window_bounds = array<i64: 1, 32>}, {pipeline_mode = #tpu.pipeline_mode<synchronous>, transform_indices = @transform_6, window_bounds = array<i64: 1, 32>}, {pipeline_mode = #tpu.pipeline_mode<synchronous>, transform_indices = @transform_7, window_bounds = array<i64: 1, 32>}, {pipeline_mode = #tpu.pipeline_mode<synchronous>, transform_indices = @transform_8, window_bounds = array<i64: 32, 128>}, {pipeline_mode = #tpu.pipeline_mode<synchronous>, transform_indices = @transform_9, window_bounds = array<i64: 1, 128>}, {pipeline_mode = #tpu.pipeline_mode<synchronous>, transform_indices = @transform_10, window_bounds = array<i64: 128, 32>}, {pipeline_mode = #tpu.pipeline_mode<synchronous>, transform_indices = @transform_11, window_bounds = array<i64: 1, 32>}, {pipeline_mode = #tpu.pipeline_mode<synchronous>, transform_indices = @transform_12, window_bounds = array<i64: 32, 128>}, {pipeline_mode = #tpu.pipeline_mode<synchronous>, transform_indices = @transform_13, window_bounds = array<i64: 1, 128>}, {transform_indices = @transform_14, window_bounds = array<i64: 2, 8, 128>}]} {
    %c0 = arith.constant 0 : index
    %c0_0 = arith.constant 0 : index
    %c0_1 = arith.constant 0 : index
    %0 = vector.load %arg1[%c0, %c0_0, %c0_1] : memref<2x8x32xf32, #tpu.memory_space<vmem>>, vector<2x8x32xf32>
    %1 = vector.shape_cast %0 : vector<2x8x32xf32> to vector<16x32xf32>
    %c0_2 = arith.constant 0 : index
    %c0_3 = arith.constant 0 : index
    %2 = vector.load %arg2[%c0_2, %c0_3] : memref<1x32xf32, #tpu.memory_space<vmem>>, vector<1x32xf32>
    %c0_4 = arith.constant 0 : index
    %c0_5 = arith.constant 0 : index
    %3 = vector.load %arg3[%c0_4, %c0_5] : memref<1x32xf32, #tpu.memory_space<vmem>>, vector<1x32xf32>
    %cst = arith.constant dense<0.000000e+00> : vector<16xf32>
    %4 = vector.multi_reduction <add>, %1, %cst [1] : vector<16x32xf32> to vector<16xf32>
    %5 = vector.shape_cast %4 : vector<16xf32> to vector<16x1xf32>
    %cst_6 = arith.constant 3.200000e+01 : f32
    %6 = vector.broadcast %cst_6 : f32 to vector<16x1xf32>
    %7 = arith.divf %5, %6 : vector<16x1xf32>
    %8 = vector.broadcast %7 : vector<16x1xf32> to vector<16x32xf32>
    %9 = arith.subf %1, %8 : vector<16x32xf32>
    %10 = arith.mulf %9, %9 : vector<16x32xf32>
    %cst_7 = arith.constant dense<0.000000e+00> : vector<16xf32>
    %11 = vector.multi_reduction <add>, %10, %cst_7 [1] : vector<16x32xf32> to vector<16xf32>
    %12 = vector.shape_cast %11 : vector<16xf32> to vector<16x1xf32>
    %cst_8 = arith.constant 3.200000e+01 : f32
    %13 = vector.broadcast %cst_8 : f32 to vector<16x1xf32>
    %14 = arith.divf %12, %13 : vector<16x1xf32>
    %15 = vector.broadcast %7 : vector<16x1xf32> to vector<16x32xf32>
    %16 = arith.subf %1, %15 : vector<16x32xf32>
    %cst_9 = arith.constant 9.99999974E-6 : f32
    %17 = vector.broadcast %cst_9 : f32 to vector<16x1xf32>
    %18 = arith.addf %14, %17 : vector<16x1xf32>
    %19 = math.rsqrt %18 : vector<16x1xf32>
    %20 = vector.broadcast %19 : vector<16x1xf32> to vector<16x32xf32>
    %21 = arith.mulf %16, %20 : vector<16x32xf32>
    %22 = vector.broadcast %2 : vector<1x32xf32> to vector<16x32xf32>
    %23 = arith.mulf %21, %22 : vector<16x32xf32>
    %24 = vector.broadcast %3 : vector<1x32xf32> to vector<16x32xf32>
    %25 = arith.addf %23, %24 : vector<16x32xf32>
    %c0_10 = arith.constant 0 : index
    %c0_11 = arith.constant 0 : index
    %26 = vector.load %arg4[%c0_10, %c0_11] : memref<32x96xf32, #tpu.memory_space<vmem>>, vector<32x96xf32>
    %cst_12 = arith.constant dense<0.000000e+00> : vector<16x96xf32>
    %27 = tpu.matmul %25, %26, %cst_12 {dimension_numbers = #tpu.dot_dimension_numbers<[1], [0], [0], [1], [0, 0, 1, 1], [], []>} : vector<16x32xf32>, vector<32x96xf32>, vector<16x96xf32> -> vector<16x96xf32>
    %cst_13 = arith.constant 0.000000e+00 : f32
    %28 = vector.broadcast %cst_13 : f32 to vector<16x32xf32>
    %29 = vector.extract_strided_slice %27 {offsets = [0, 0], sizes = [16, 4], strides = [1, 1]} : vector<16x96xf32> to vector<16x4xf32>
    %30 = vector.shape_cast %29 : vector<16x4xf32> to vector<2x8x4xf32>
    %31 = vector.extract_strided_slice %27 {offsets = [0, 32], sizes = [16, 4], strides = [1, 1]} : vector<16x96xf32> to vector<16x4xf32>
    %32 = vector.shape_cast %31 : vector<16x4xf32> to vector<2x8x4xf32>
    %33 = vector.extract_strided_slice %27 {offsets = [0, 64], sizes = [16, 4], strides = [1, 1]} : vector<16x96xf32> to vector<16x4xf32>
    %34 = vector.shape_cast %33 : vector<16x4xf32> to vector<2x8x4xf32>
    "tpu.trace_start"() <{level = 10 : i32, message = "bnd,bmd->bnm"}> : () -> ()
    %cst_14 = arith.constant dense<0.000000e+00> : vector<2x8x8xf32>
    %35 = tpu.matmul %30, %32, %cst_14 {dimension_numbers = #tpu.dot_dimension_numbers<[2], [2], [1], [1], [0, 0, 0, 1, 1, 1], [0], [0]>} : vector<2x8x4xf32>, vector<2x8x4xf32>, vector<2x8x8xf32> -> vector<2x8x8xf32>
    "tpu.trace_stop"() : () -> ()
    %cst_15 = arith.constant dense<0xFF800000> : vector<2x8xf32>
    %36 = vector.multi_reduction <maximumf>, %35, %cst_15 [2] : vector<2x8x8xf32> to vector<2x8xf32>
    %37 = vector.shape_cast %36 : vector<2x8xf32> to vector<2x8x1xf32>
    %38 = vector.broadcast %37 : vector<2x8x1xf32> to vector<2x8x8xf32>
    %39 = arith.subf %35, %38 : vector<2x8x8xf32>
    %40 = math.exp %39 : vector<2x8x8xf32>
    %cst_16 = arith.constant dense<0.000000e+00> : vector<2x8xf32>
    %41 = vector.multi_reduction <add>, %40, %cst_16 [2] : vector<2x8x8xf32> to vector<2x8xf32>
    %42 = vector.shape_cast %41 : vector<2x8xf32> to vector<2x8x1xf32>
    %43 = tpu.reciprocal %42 {approx = true} : vector<2x8x1xf32> -> vector<2x8x1xf32>
    %44 = vector.broadcast %43 : vector<2x8x1xf32> to vector<2x8x8xf32>
    %45 = arith.mulf %40, %44 : vector<2x8x8xf32>
    "tpu.trace_start"() <{level = 10 : i32, message = "bnm,bmd->bnd"}> : () -> ()
    %cst_17 = arith.constant dense<0.000000e+00> : vector<2x8x4xf32>
    %46 = tpu.matmul %45, %34, %cst_17 {dimension_numbers = #tpu.dot_dimension_numbers<[2], [1], [1], [2], [0, 0, 0, 1, 1, 2], [0], [0]>} : vector<2x8x8xf32>, vector<2x8x4xf32>, vector<2x8x4xf32> -> vector<2x8x4xf32>
    "tpu.trace_stop"() : () -> ()
    %47 = vector.shape_cast %46 : vector<2x8x4xf32> to vector<16x4xf32>
    %c0_18 = arith.constant 0 : index
    %c0_19 = arith.constant 0 : index
    %c0_20 = arith.constant 0 : index
    %48 = vector.load %arg5[%c0_18, %c0_19, %c0_20] : memref<8x4x32xf32, #tpu.memory_space<vmem>>, vector<1x4x32xf32>
    %49 = vector.shape_cast %48 : vector<1x4x32xf32> to vector<4x32xf32>
    %cst_21 = arith.constant dense<0.000000e+00> : vector<16x32xf32>
    %50 = tpu.matmul %47, %49, %cst_21 {dimension_numbers = #tpu.dot_dimension_numbers<[1], [0], [0], [1], [0, 0, 1, 1], [], []>} : vector<16x4xf32>, vector<4x32xf32>, vector<16x32xf32> -> vector<16x32xf32>
    %51 = arith.addf %28, %50 : vector<16x32xf32>
    %52 = vector.extract_strided_slice %27 {offsets = [0, 4], sizes = [16, 4], strides = [1, 1]} : vector<16x96xf32> to vector<16x4xf32>
    %53 = vector.shape_cast %52 : vector<16x4xf32> to vector<2x8x4xf32>
    %54 = vector.extract_strided_slice %27 {offsets = [0, 36], sizes = [16, 4], strides = [1, 1]} : vector<16x96xf32> to vector<16x4xf32>
    %55 = vector.shape_cast %54 : vector<16x4xf32> to vector<2x8x4xf32>
    %56 = vector.extract_strided_slice %27 {offsets = [0, 68], sizes = [16, 4], strides = [1, 1]} : vector<16x96xf32> to vector<16x4xf32>
    %57 = vector.shape_cast %56 : vector<16x4xf32> to vector<2x8x4xf32>
    "tpu.trace_start"() <{level = 10 : i32, message = "bnd,bmd->bnm"}> : () -> ()
    %cst_22 = arith.constant dense<0.000000e+00> : vector<2x8x8xf32>
    %58 = tpu.matmul %53, %55, %cst_22 {dimension_numbers = #tpu.dot_dimension_numbers<[2], [2], [1], [1], [0, 0, 0, 1, 1, 1], [0], [0]>} : vector<2x8x4xf32>, vector<2x8x4xf32>, vector<2x8x8xf32> -> vector<2x8x8xf32>
    "tpu.trace_stop"() : () -> ()
    %cst_23 = arith.constant dense<0xFF800000> : vector<2x8xf32>
    %59 = vector.multi_reduction <maximumf>, %58, %cst_23 [2] : vector<2x8x8xf32> to vector<2x8xf32>
    %60 = vector.shape_cast %59 : vector<2x8xf32> to vector<2x8x1xf32>
    %61 = vector.broadcast %60 : vector<2x8x1xf32> to vector<2x8x8xf32>
    %62 = arith.subf %58, %61 : vector<2x8x8xf32>
    %63 = math.exp %62 : vector<2x8x8xf32>
    %cst_24 = arith.constant dense<0.000000e+00> : vector<2x8xf32>
    %64 = vector.multi_reduction <add>, %63, %cst_24 [2] : vector<2x8x8xf32> to vector<2x8xf32>
    %65 = vector.shape_cast %64 : vector<2x8xf32> to vector<2x8x1xf32>
    %66 = tpu.reciprocal %65 {approx = true} : vector<2x8x1xf32> -> vector<2x8x1xf32>
    %67 = vector.broadcast %66 : vector<2x8x1xf32> to vector<2x8x8xf32>
    %68 = arith.mulf %63, %67 : vector<2x8x8xf32>
    "tpu.trace_start"() <{level = 10 : i32, message = "bnm,bmd->bnd"}> : () -> ()
    %cst_25 = arith.constant dense<0.000000e+00> : vector<2x8x4xf32>
    %69 = tpu.matmul %68, %57, %cst_25 {dimension_numbers = #tpu.dot_dimension_numbers<[2], [1], [1], [2], [0, 0, 0, 1, 1, 2], [0], [0]>} : vector<2x8x8xf32>, vector<2x8x4xf32>, vector<2x8x4xf32> -> vector<2x8x4xf32>
    "tpu.trace_stop"() : () -> ()
    %70 = vector.shape_cast %69 : vector<2x8x4xf32> to vector<16x4xf32>
    %c1 = arith.constant 1 : index
    %c0_26 = arith.constant 0 : index
    %c0_27 = arith.constant 0 : index
    %71 = vector.load %arg5[%c1, %c0_26, %c0_27] : memref<8x4x32xf32, #tpu.memory_space<vmem>>, vector<1x4x32xf32>
    %72 = vector.shape_cast %71 : vector<1x4x32xf32> to vector<4x32xf32>
    %cst_28 = arith.constant dense<0.000000e+00> : vector<16x32xf32>
    %73 = tpu.matmul %70, %72, %cst_28 {dimension_numbers = #tpu.dot_dimension_numbers<[1], [0], [0], [1], [0, 0, 1, 1], [], []>} : vector<16x4xf32>, vector<4x32xf32>, vector<16x32xf32> -> vector<16x32xf32>
    %74 = arith.addf %51, %73 : vector<16x32xf32>
    %75 = vector.extract_strided_slice %27 {offsets = [0, 8], sizes = [16, 4], strides = [1, 1]} : vector<16x96xf32> to vector<16x4xf32>
    %76 = vector.shape_cast %75 : vector<16x4xf32> to vector<2x8x4xf32>
    %77 = vector.extract_strided_slice %27 {offsets = [0, 40], sizes = [16, 4], strides = [1, 1]} : vector<16x96xf32> to vector<16x4xf32>
    %78 = vector.shape_cast %77 : vector<16x4xf32> to vector<2x8x4xf32>
    %79 = vector.extract_strided_slice %27 {offsets = [0, 72], sizes = [16, 4], strides = [1, 1]} : vector<16x96xf32> to vector<16x4xf32>
    %80 = vector.shape_cast %79 : vector<16x4xf32> to vector<2x8x4xf32>
    "tpu.trace_start"() <{level = 10 : i32, message = "bnd,bmd->bnm"}> : () -> ()
    %cst_29 = arith.constant dense<0.000000e+00> : vector<2x8x8xf32>
    %81 = tpu.matmul %76, %78, %cst_29 {dimension_numbers = #tpu.dot_dimension_numbers<[2], [2], [1], [1], [0, 0, 0, 1, 1, 1], [0], [0]>} : vector<2x8x4xf32>, vector<2x8x4xf32>, vector<2x8x8xf32> -> vector<2x8x8xf32>
    "tpu.trace_stop"() : () -> ()
    %cst_30 = arith.constant dense<0xFF800000> : vector<2x8xf32>
    %82 = vector.multi_reduction <maximumf>, %81, %cst_30 [2] : vector<2x8x8xf32> to vector<2x8xf32>
    %83 = vector.shape_cast %82 : vector<2x8xf32> to vector<2x8x1xf32>
    %84 = vector.broadcast %83 : vector<2x8x1xf32> to vector<2x8x8xf32>
    %85 = arith.subf %81, %84 : vector<2x8x8xf32>
    %86 = math.exp %85 : vector<2x8x8xf32>
    %cst_31 = arith.constant dense<0.000000e+00> : vector<2x8xf32>
    %87 = vector.multi_reduction <add>, %86, %cst_31 [2] : vector<2x8x8xf32> to vector<2x8xf32>
    %88 = vector.shape_cast %87 : vector<2x8xf32> to vector<2x8x1xf32>
    %89 = tpu.reciprocal %88 {approx = true} : vector<2x8x1xf32> -> vector<2x8x1xf32>
    %90 = vector.broadcast %89 : vector<2x8x1xf32> to vector<2x8x8xf32>
    %91 = arith.mulf %86, %90 : vector<2x8x8xf32>
    "tpu.trace_start"() <{level = 10 : i32, message = "bnm,bmd->bnd"}> : () -> ()
    %cst_32 = arith.constant dense<0.000000e+00> : vector<2x8x4xf32>
    %92 = tpu.matmul %91, %80, %cst_32 {dimension_numbers = #tpu.dot_dimension_numbers<[2], [1], [1], [2], [0, 0, 0, 1, 1, 2], [0], [0]>} : vector<2x8x8xf32>, vector<2x8x4xf32>, vector<2x8x4xf32> -> vector<2x8x4xf32>
    "tpu.trace_stop"() : () -> ()
    %93 = vector.shape_cast %92 : vector<2x8x4xf32> to vector<16x4xf32>
    %c2 = arith.constant 2 : index
    %c0_33 = arith.constant 0 : index
    %c0_34 = arith.constant 0 : index
    %94 = vector.load %arg5[%c2, %c0_33, %c0_34] : memref<8x4x32xf32, #tpu.memory_space<vmem>>, vector<1x4x32xf32>
    %95 = vector.shape_cast %94 : vector<1x4x32xf32> to vector<4x32xf32>
    %cst_35 = arith.constant dense<0.000000e+00> : vector<16x32xf32>
    %96 = tpu.matmul %93, %95, %cst_35 {dimension_numbers = #tpu.dot_dimension_numbers<[1], [0], [0], [1], [0, 0, 1, 1], [], []>} : vector<16x4xf32>, vector<4x32xf32>, vector<16x32xf32> -> vector<16x32xf32>
    %97 = arith.addf %74, %96 : vector<16x32xf32>
    %98 = vector.extract_strided_slice %27 {offsets = [0, 12], sizes = [16, 4], strides = [1, 1]} : vector<16x96xf32> to vector<16x4xf32>
    %99 = vector.shape_cast %98 : vector<16x4xf32> to vector<2x8x4xf32>
    %100 = vector.extract_strided_slice %27 {offsets = [0, 44], sizes = [16, 4], strides = [1, 1]} : vector<16x96xf32> to vector<16x4xf32>
    %101 = vector.shape_cast %100 : vector<16x4xf32> to vector<2x8x4xf32>
    %102 = vector.extract_strided_slice %27 {offsets = [0, 76], sizes = [16, 4], strides = [1, 1]} : vector<16x96xf32> to vector<16x4xf32>
    %103 = vector.shape_cast %102 : vector<16x4xf32> to vector<2x8x4xf32>
    "tpu.trace_start"() <{level = 10 : i32, message = "bnd,bmd->bnm"}> : () -> ()
    %cst_36 = arith.constant dense<0.000000e+00> : vector<2x8x8xf32>
    %104 = tpu.matmul %99, %101, %cst_36 {dimension_numbers = #tpu.dot_dimension_numbers<[2], [2], [1], [1], [0, 0, 0, 1, 1, 1], [0], [0]>} : vector<2x8x4xf32>, vector<2x8x4xf32>, vector<2x8x8xf32> -> vector<2x8x8xf32>
    "tpu.trace_stop"() : () -> ()
    %cst_37 = arith.constant dense<0xFF800000> : vector<2x8xf32>
    %105 = vector.multi_reduction <maximumf>, %104, %cst_37 [2] : vector<2x8x8xf32> to vector<2x8xf32>
    %106 = vector.shape_cast %105 : vector<2x8xf32> to vector<2x8x1xf32>
    %107 = vector.broadcast %106 : vector<2x8x1xf32> to vector<2x8x8xf32>
    %108 = arith.subf %104, %107 : vector<2x8x8xf32>
    %109 = math.exp %108 : vector<2x8x8xf32>
    %cst_38 = arith.constant dense<0.000000e+00> : vector<2x8xf32>
    %110 = vector.multi_reduction <add>, %109, %cst_38 [2] : vector<2x8x8xf32> to vector<2x8xf32>
    %111 = vector.shape_cast %110 : vector<2x8xf32> to vector<2x8x1xf32>
    %112 = tpu.reciprocal %111 {approx = true} : vector<2x8x1xf32> -> vector<2x8x1xf32>
    %113 = vector.broadcast %112 : vector<2x8x1xf32> to vector<2x8x8xf32>
    %114 = arith.mulf %109, %113 : vector<2x8x8xf32>
    "tpu.trace_start"() <{level = 10 : i32, message = "bnm,bmd->bnd"}> : () -> ()
    %cst_39 = arith.constant dense<0.000000e+00> : vector<2x8x4xf32>
    %115 = tpu.matmul %114, %103, %cst_39 {dimension_numbers = #tpu.dot_dimension_numbers<[2], [1], [1], [2], [0, 0, 0, 1, 1, 2], [0], [0]>} : vector<2x8x8xf32>, vector<2x8x4xf32>, vector<2x8x4xf32> -> vector<2x8x4xf32>
    "tpu.trace_stop"() : () -> ()
    %116 = vector.shape_cast %115 : vector<2x8x4xf32> to vector<16x4xf32>
    %c3 = arith.constant 3 : index
    %c0_40 = arith.constant 0 : index
    %c0_41 = arith.constant 0 : index
    %117 = vector.load %arg5[%c3, %c0_40, %c0_41] : memref<8x4x32xf32, #tpu.memory_space<vmem>>, vector<1x4x32xf32>
    %118 = vector.shape_cast %117 : vector<1x4x32xf32> to vector<4x32xf32>
    %cst_42 = arith.constant dense<0.000000e+00> : vector<16x32xf32>
    %119 = tpu.matmul %116, %118, %cst_42 {dimension_numbers = #tpu.dot_dimension_numbers<[1], [0], [0], [1], [0, 0, 1, 1], [], []>} : vector<16x4xf32>, vector<4x32xf32>, vector<16x32xf32> -> vector<16x32xf32>
    %120 = arith.addf %97, %119 : vector<16x32xf32>
    %121 = vector.extract_strided_slice %27 {offsets = [0, 16], sizes = [16, 4], strides = [1, 1]} : vector<16x96xf32> to vector<16x4xf32>
    %122 = vector.shape_cast %121 : vector<16x4xf32> to vector<2x8x4xf32>
    %123 = vector.extract_strided_slice %27 {offsets = [0, 48], sizes = [16, 4], strides = [1, 1]} : vector<16x96xf32> to vector<16x4xf32>
    %124 = vector.shape_cast %123 : vector<16x4xf32> to vector<2x8x4xf32>
    %125 = vector.extract_strided_slice %27 {offsets = [0, 80], sizes = [16, 4], strides = [1, 1]} : vector<16x96xf32> to vector<16x4xf32>
    %126 = vector.shape_cast %125 : vector<16x4xf32> to vector<2x8x4xf32>
    "tpu.trace_start"() <{level = 10 : i32, message = "bnd,bmd->bnm"}> : () -> ()
    %cst_43 = arith.constant dense<0.000000e+00> : vector<2x8x8xf32>
    %127 = tpu.matmul %122, %124, %cst_43 {dimension_numbers = #tpu.dot_dimension_numbers<[2], [2], [1], [1], [0, 0, 0, 1, 1, 1], [0], [0]>} : vector<2x8x4xf32>, vector<2x8x4xf32>, vector<2x8x8xf32> -> vector<2x8x8xf32>
    "tpu.trace_stop"() : () -> ()
    %cst_44 = arith.constant dense<0xFF800000> : vector<2x8xf32>
    %128 = vector.multi_reduction <maximumf>, %127, %cst_44 [2] : vector<2x8x8xf32> to vector<2x8xf32>
    %129 = vector.shape_cast %128 : vector<2x8xf32> to vector<2x8x1xf32>
    %130 = vector.broadcast %129 : vector<2x8x1xf32> to vector<2x8x8xf32>
    %131 = arith.subf %127, %130 : vector<2x8x8xf32>
    %132 = math.exp %131 : vector<2x8x8xf32>
    %cst_45 = arith.constant dense<0.000000e+00> : vector<2x8xf32>
    %133 = vector.multi_reduction <add>, %132, %cst_45 [2] : vector<2x8x8xf32> to vector<2x8xf32>
    %134 = vector.shape_cast %133 : vector<2x8xf32> to vector<2x8x1xf32>
    %135 = tpu.reciprocal %134 {approx = true} : vector<2x8x1xf32> -> vector<2x8x1xf32>
    %136 = vector.broadcast %135 : vector<2x8x1xf32> to vector<2x8x8xf32>
    %137 = arith.mulf %132, %136 : vector<2x8x8xf32>
    "tpu.trace_start"() <{level = 10 : i32, message = "bnm,bmd->bnd"}> : () -> ()
    %cst_46 = arith.constant dense<0.000000e+00> : vector<2x8x4xf32>
    %138 = tpu.matmul %137, %126, %cst_46 {dimension_numbers = #tpu.dot_dimension_numbers<[2], [1], [1], [2], [0, 0, 0, 1, 1, 2], [0], [0]>} : vector<2x8x8xf32>, vector<2x8x4xf32>, vector<2x8x4xf32> -> vector<2x8x4xf32>
    "tpu.trace_stop"() : () -> ()
    %139 = vector.shape_cast %138 : vector<2x8x4xf32> to vector<16x4xf32>
    %c4 = arith.constant 4 : index
    %c0_47 = arith.constant 0 : index
    %c0_48 = arith.constant 0 : index
    %140 = vector.load %arg5[%c4, %c0_47, %c0_48] : memref<8x4x32xf32, #tpu.memory_space<vmem>>, vector<1x4x32xf32>
    %141 = vector.shape_cast %140 : vector<1x4x32xf32> to vector<4x32xf32>
    %cst_49 = arith.constant dense<0.000000e+00> : vector<16x32xf32>
    %142 = tpu.matmul %139, %141, %cst_49 {dimension_numbers = #tpu.dot_dimension_numbers<[1], [0], [0], [1], [0, 0, 1, 1], [], []>} : vector<16x4xf32>, vector<4x32xf32>, vector<16x32xf32> -> vector<16x32xf32>
    %143 = arith.addf %120, %142 : vector<16x32xf32>
    %144 = vector.extract_strided_slice %27 {offsets = [0, 20], sizes = [16, 4], strides = [1, 1]} : vector<16x96xf32> to vector<16x4xf32>
    %145 = vector.shape_cast %144 : vector<16x4xf32> to vector<2x8x4xf32>
    %146 = vector.extract_strided_slice %27 {offsets = [0, 52], sizes = [16, 4], strides = [1, 1]} : vector<16x96xf32> to vector<16x4xf32>
    %147 = vector.shape_cast %146 : vector<16x4xf32> to vector<2x8x4xf32>
    %148 = vector.extract_strided_slice %27 {offsets = [0, 84], sizes = [16, 4], strides = [1, 1]} : vector<16x96xf32> to vector<16x4xf32>
    %149 = vector.shape_cast %148 : vector<16x4xf32> to vector<2x8x4xf32>
    "tpu.trace_start"() <{level = 10 : i32, message = "bnd,bmd->bnm"}> : () -> ()
    %cst_50 = arith.constant dense<0.000000e+00> : vector<2x8x8xf32>
    %150 = tpu.matmul %145, %147, %cst_50 {dimension_numbers = #tpu.dot_dimension_numbers<[2], [2], [1], [1], [0, 0, 0, 1, 1, 1], [0], [0]>} : vector<2x8x4xf32>, vector<2x8x4xf32>, vector<2x8x8xf32> -> vector<2x8x8xf32>
    "tpu.trace_stop"() : () -> ()
    %cst_51 = arith.constant dense<0xFF800000> : vector<2x8xf32>
    %151 = vector.multi_reduction <maximumf>, %150, %cst_51 [2] : vector<2x8x8xf32> to vector<2x8xf32>
    %152 = vector.shape_cast %151 : vector<2x8xf32> to vector<2x8x1xf32>
    %153 = vector.broadcast %152 : vector<2x8x1xf32> to vector<2x8x8xf32>
    %154 = arith.subf %150, %153 : vector<2x8x8xf32>
    %155 = math.exp %154 : vector<2x8x8xf32>
    %cst_52 = arith.constant dense<0.000000e+00> : vector<2x8xf32>
    %156 = vector.multi_reduction <add>, %155, %cst_52 [2] : vector<2x8x8xf32> to vector<2x8xf32>
    %157 = vector.shape_cast %156 : vector<2x8xf32> to vector<2x8x1xf32>
    %158 = tpu.reciprocal %157 {approx = true} : vector<2x8x1xf32> -> vector<2x8x1xf32>
    %159 = vector.broadcast %158 : vector<2x8x1xf32> to vector<2x8x8xf32>
    %160 = arith.mulf %155, %159 : vector<2x8x8xf32>
    "tpu.trace_start"() <{level = 10 : i32, message = "bnm,bmd->bnd"}> : () -> ()
    %cst_53 = arith.constant dense<0.000000e+00> : vector<2x8x4xf32>
    %161 = tpu.matmul %160, %149, %cst_53 {dimension_numbers = #tpu.dot_dimension_numbers<[2], [1], [1], [2], [0, 0, 0, 1, 1, 2], [0], [0]>} : vector<2x8x8xf32>, vector<2x8x4xf32>, vector<2x8x4xf32> -> vector<2x8x4xf32>
    "tpu.trace_stop"() : () -> ()
    %162 = vector.shape_cast %161 : vector<2x8x4xf32> to vector<16x4xf32>
    %c5 = arith.constant 5 : index
    %c0_54 = arith.constant 0 : index
    %c0_55 = arith.constant 0 : index
    %163 = vector.load %arg5[%c5, %c0_54, %c0_55] : memref<8x4x32xf32, #tpu.memory_space<vmem>>, vector<1x4x32xf32>
    %164 = vector.shape_cast %163 : vector<1x4x32xf32> to vector<4x32xf32>
    %cst_56 = arith.constant dense<0.000000e+00> : vector<16x32xf32>
    %165 = tpu.matmul %162, %164, %cst_56 {dimension_numbers = #tpu.dot_dimension_numbers<[1], [0], [0], [1], [0, 0, 1, 1], [], []>} : vector<16x4xf32>, vector<4x32xf32>, vector<16x32xf32> -> vector<16x32xf32>
    %166 = arith.addf %143, %165 : vector<16x32xf32>
    %167 = vector.extract_strided_slice %27 {offsets = [0, 24], sizes = [16, 4], strides = [1, 1]} : vector<16x96xf32> to vector<16x4xf32>
    %168 = vector.shape_cast %167 : vector<16x4xf32> to vector<2x8x4xf32>
    %169 = vector.extract_strided_slice %27 {offsets = [0, 56], sizes = [16, 4], strides = [1, 1]} : vector<16x96xf32> to vector<16x4xf32>
    %170 = vector.shape_cast %169 : vector<16x4xf32> to vector<2x8x4xf32>
    %171 = vector.extract_strided_slice %27 {offsets = [0, 88], sizes = [16, 4], strides = [1, 1]} : vector<16x96xf32> to vector<16x4xf32>
    %172 = vector.shape_cast %171 : vector<16x4xf32> to vector<2x8x4xf32>
    "tpu.trace_start"() <{level = 10 : i32, message = "bnd,bmd->bnm"}> : () -> ()
    %cst_57 = arith.constant dense<0.000000e+00> : vector<2x8x8xf32>
    %173 = tpu.matmul %168, %170, %cst_57 {dimension_numbers = #tpu.dot_dimension_numbers<[2], [2], [1], [1], [0, 0, 0, 1, 1, 1], [0], [0]>} : vector<2x8x4xf32>, vector<2x8x4xf32>, vector<2x8x8xf32> -> vector<2x8x8xf32>
    "tpu.trace_stop"() : () -> ()
    %cst_58 = arith.constant dense<0xFF800000> : vector<2x8xf32>
    %174 = vector.multi_reduction <maximumf>, %173, %cst_58 [2] : vector<2x8x8xf32> to vector<2x8xf32>
    %175 = vector.shape_cast %174 : vector<2x8xf32> to vector<2x8x1xf32>
    %176 = vector.broadcast %175 : vector<2x8x1xf32> to vector<2x8x8xf32>
    %177 = arith.subf %173, %176 : vector<2x8x8xf32>
    %178 = math.exp %177 : vector<2x8x8xf32>
    %cst_59 = arith.constant dense<0.000000e+00> : vector<2x8xf32>
    %179 = vector.multi_reduction <add>, %178, %cst_59 [2] : vector<2x8x8xf32> to vector<2x8xf32>
    %180 = vector.shape_cast %179 : vector<2x8xf32> to vector<2x8x1xf32>
    %181 = tpu.reciprocal %180 {approx = true} : vector<2x8x1xf32> -> vector<2x8x1xf32>
    %182 = vector.broadcast %181 : vector<2x8x1xf32> to vector<2x8x8xf32>
    %183 = arith.mulf %178, %182 : vector<2x8x8xf32>
    "tpu.trace_start"() <{level = 10 : i32, message = "bnm,bmd->bnd"}> : () -> ()
    %cst_60 = arith.constant dense<0.000000e+00> : vector<2x8x4xf32>
    %184 = tpu.matmul %183, %172, %cst_60 {dimension_numbers = #tpu.dot_dimension_numbers<[2], [1], [1], [2], [0, 0, 0, 1, 1, 2], [0], [0]>} : vector<2x8x8xf32>, vector<2x8x4xf32>, vector<2x8x4xf32> -> vector<2x8x4xf32>
    "tpu.trace_stop"() : () -> ()
    %185 = vector.shape_cast %184 : vector<2x8x4xf32> to vector<16x4xf32>
    %c6 = arith.constant 6 : index
    %c0_61 = arith.constant 0 : index
    %c0_62 = arith.constant 0 : index
    %186 = vector.load %arg5[%c6, %c0_61, %c0_62] : memref<8x4x32xf32, #tpu.memory_space<vmem>>, vector<1x4x32xf32>
    %187 = vector.shape_cast %186 : vector<1x4x32xf32> to vector<4x32xf32>
    %cst_63 = arith.constant dense<0.000000e+00> : vector<16x32xf32>
    %188 = tpu.matmul %185, %187, %cst_63 {dimension_numbers = #tpu.dot_dimension_numbers<[1], [0], [0], [1], [0, 0, 1, 1], [], []>} : vector<16x4xf32>, vector<4x32xf32>, vector<16x32xf32> -> vector<16x32xf32>
    %189 = arith.addf %166, %188 : vector<16x32xf32>
    %190 = vector.extract_strided_slice %27 {offsets = [0, 28], sizes = [16, 4], strides = [1, 1]} : vector<16x96xf32> to vector<16x4xf32>
    %191 = vector.shape_cast %190 : vector<16x4xf32> to vector<2x8x4xf32>
    %192 = vector.extract_strided_slice %27 {offsets = [0, 60], sizes = [16, 4], strides = [1, 1]} : vector<16x96xf32> to vector<16x4xf32>
    %193 = vector.shape_cast %192 : vector<16x4xf32> to vector<2x8x4xf32>
    %194 = vector.extract_strided_slice %27 {offsets = [0, 92], sizes = [16, 4], strides = [1, 1]} : vector<16x96xf32> to vector<16x4xf32>
    %195 = vector.shape_cast %194 : vector<16x4xf32> to vector<2x8x4xf32>
    "tpu.trace_start"() <{level = 10 : i32, message = "bnd,bmd->bnm"}> : () -> ()
    %cst_64 = arith.constant dense<0.000000e+00> : vector<2x8x8xf32>
    %196 = tpu.matmul %191, %193, %cst_64 {dimension_numbers = #tpu.dot_dimension_numbers<[2], [2], [1], [1], [0, 0, 0, 1, 1, 1], [0], [0]>} : vector<2x8x4xf32>, vector<2x8x4xf32>, vector<2x8x8xf32> -> vector<2x8x8xf32>
    "tpu.trace_stop"() : () -> ()
    %cst_65 = arith.constant dense<0xFF800000> : vector<2x8xf32>
    %197 = vector.multi_reduction <maximumf>, %196, %cst_65 [2] : vector<2x8x8xf32> to vector<2x8xf32>
    %198 = vector.shape_cast %197 : vector<2x8xf32> to vector<2x8x1xf32>
    %199 = vector.broadcast %198 : vector<2x8x1xf32> to vector<2x8x8xf32>
    %200 = arith.subf %196, %199 : vector<2x8x8xf32>
    %201 = math.exp %200 : vector<2x8x8xf32>
    %cst_66 = arith.constant dense<0.000000e+00> : vector<2x8xf32>
    %202 = vector.multi_reduction <add>, %201, %cst_66 [2] : vector<2x8x8xf32> to vector<2x8xf32>
    %203 = vector.shape_cast %202 : vector<2x8xf32> to vector<2x8x1xf32>
    %204 = tpu.reciprocal %203 {approx = true} : vector<2x8x1xf32> -> vector<2x8x1xf32>
    %205 = vector.broadcast %204 : vector<2x8x1xf32> to vector<2x8x8xf32>
    %206 = arith.mulf %201, %205 : vector<2x8x8xf32>
    "tpu.trace_start"() <{level = 10 : i32, message = "bnm,bmd->bnd"}> : () -> ()
    %cst_67 = arith.constant dense<0.000000e+00> : vector<2x8x4xf32>
    %207 = tpu.matmul %206, %195, %cst_67 {dimension_numbers = #tpu.dot_dimension_numbers<[2], [1], [1], [2], [0, 0, 0, 1, 1, 2], [0], [0]>} : vector<2x8x8xf32>, vector<2x8x4xf32>, vector<2x8x4xf32> -> vector<2x8x4xf32>
    "tpu.trace_stop"() : () -> ()
    %208 = vector.shape_cast %207 : vector<2x8x4xf32> to vector<16x4xf32>
    %c7 = arith.constant 7 : index
    %c0_68 = arith.constant 0 : index
    %c0_69 = arith.constant 0 : index
    %209 = vector.load %arg5[%c7, %c0_68, %c0_69] : memref<8x4x32xf32, #tpu.memory_space<vmem>>, vector<1x4x32xf32>
    %210 = vector.shape_cast %209 : vector<1x4x32xf32> to vector<4x32xf32>
    %cst_70 = arith.constant dense<0.000000e+00> : vector<16x32xf32>
    %211 = tpu.matmul %208, %210, %cst_70 {dimension_numbers = #tpu.dot_dimension_numbers<[1], [0], [0], [1], [0, 0, 1, 1], [], []>} : vector<16x4xf32>, vector<4x32xf32>, vector<16x32xf32> -> vector<16x32xf32>
    %212 = arith.addf %189, %211 : vector<16x32xf32>
    %213 = arith.addf %1, %212 : vector<16x32xf32>
    %c0_71 = arith.constant 0 : index
    %c0_72 = arith.constant 0 : index
    %214 = vector.load %arg6[%c0_71, %c0_72] : memref<1x32xf32, #tpu.memory_space<vmem>>, vector<1x32xf32>
    %215 = vector.broadcast %214 : vector<1x32xf32> to vector<16x32xf32>
    %216 = arith.addf %213, %215 : vector<16x32xf32>
    %c0_73 = arith.constant 0 : index
    %c0_74 = arith.constant 0 : index
    %217 = vector.load %arg7[%c0_73, %c0_74] : memref<1x32xf32, #tpu.memory_space<vmem>>, vector<1x32xf32>
    %c0_75 = arith.constant 0 : index
    %c0_76 = arith.constant 0 : index
    %218 = vector.load %arg8[%c0_75, %c0_76] : memref<1x32xf32, #tpu.memory_space<vmem>>, vector<1x32xf32>
    %cst_77 = arith.constant dense<0.000000e+00> : vector<16xf32>
    %219 = vector.multi_reduction <add>, %216, %cst_77 [1] : vector<16x32xf32> to vector<16xf32>
    %220 = vector.shape_cast %219 : vector<16xf32> to vector<16x1xf32>
    %cst_78 = arith.constant 3.200000e+01 : f32
    %221 = vector.broadcast %cst_78 : f32 to vector<16x1xf32>
    %222 = arith.divf %220, %221 : vector<16x1xf32>
    %223 = vector.broadcast %222 : vector<16x1xf32> to vector<16x32xf32>
    %224 = arith.subf %216, %223 : vector<16x32xf32>
    %225 = arith.mulf %224, %224 : vector<16x32xf32>
    %cst_79 = arith.constant dense<0.000000e+00> : vector<16xf32>
    %226 = vector.multi_reduction <add>, %225, %cst_79 [1] : vector<16x32xf32> to vector<16xf32>
    %227 = vector.shape_cast %226 : vector<16xf32> to vector<16x1xf32>
    %cst_80 = arith.constant 3.200000e+01 : f32
    %228 = vector.broadcast %cst_80 : f32 to vector<16x1xf32>
    %229 = arith.divf %227, %228 : vector<16x1xf32>
    %230 = vector.broadcast %222 : vector<16x1xf32> to vector<16x32xf32>
    %231 = arith.subf %216, %230 : vector<16x32xf32>
    %cst_81 = arith.constant 9.99999974E-6 : f32
    %232 = vector.broadcast %cst_81 : f32 to vector<16x1xf32>
    %233 = arith.addf %229, %232 : vector<16x1xf32>
    %234 = math.rsqrt %233 : vector<16x1xf32>
    %235 = vector.broadcast %234 : vector<16x1xf32> to vector<16x32xf32>
    %236 = arith.mulf %231, %235 : vector<16x32xf32>
    %237 = vector.broadcast %217 : vector<1x32xf32> to vector<16x32xf32>
    %238 = arith.mulf %236, %237 : vector<16x32xf32>
    %239 = vector.broadcast %218 : vector<1x32xf32> to vector<16x32xf32>
    %240 = arith.addf %238, %239 : vector<16x32xf32>
    %c0_82 = arith.constant 0 : index
    %c0_83 = arith.constant 0 : index
    %241 = vector.load %arg9[%c0_82, %c0_83] : memref<32x128xf32, #tpu.memory_space<vmem>>, vector<32x128xf32>
    %cst_84 = arith.constant dense<0.000000e+00> : vector<16x128xf32>
    %242 = tpu.matmul %240, %241, %cst_84 {dimension_numbers = #tpu.dot_dimension_numbers<[1], [0], [0], [1], [0, 0, 1, 1], [], []>} : vector<16x32xf32>, vector<32x128xf32>, vector<16x128xf32> -> vector<16x128xf32>
    %c0_85 = arith.constant 0 : index
    %c0_86 = arith.constant 0 : index
    %243 = vector.load %arg10[%c0_85, %c0_86] : memref<1x128xf32, #tpu.memory_space<vmem>>, vector<1x128xf32>
    %244 = vector.broadcast %243 : vector<1x128xf32> to vector<16x128xf32>
    %245 = arith.addf %242, %244 : vector<16x128xf32>
    %cst_87 = arith.constant 0.000000e+00 : f32
    %246 = vector.broadcast %cst_87 : f32 to vector<16x128xf32>
    %247 = arith.maximumf %245, %246 : vector<16x128xf32>
    %c0_88 = arith.constant 0 : index
    %c0_89 = arith.constant 0 : index
    %248 = vector.load %arg11[%c0_88, %c0_89] : memref<128x32xf32, #tpu.memory_space<vmem>>, vector<128x32xf32>
    %cst_90 = arith.constant dense<0.000000e+00> : vector<16x32xf32>
    %249 = tpu.matmul %247, %248, %cst_90 {dimension_numbers = #tpu.dot_dimension_numbers<[1], [0], [0], [1], [0, 0, 1, 1], [], []>} : vector<16x128xf32>, vector<128x32xf32>, vector<16x32xf32> -> vector<16x32xf32>
    %250 = arith.addf %216, %249 : vector<16x32xf32>
    %c0_91 = arith.constant 0 : index
    %c0_92 = arith.constant 0 : index
    %251 = vector.load %arg12[%c0_91, %c0_92] : memref<1x32xf32, #tpu.memory_space<vmem>>, vector<1x32xf32>
    %252 = vector.broadcast %251 : vector<1x32xf32> to vector<16x32xf32>
    %253 = arith.addf %250, %252 : vector<16x32xf32>
    %c0_93 = arith.constant 0 : index
    %c0_94 = arith.constant 0 : index
    %254 = vector.load %arg13[%c0_93, %c0_94] : memref<32x128xf32, #tpu.memory_space<vmem>>, vector<32x128xf32>
    %cst_95 = arith.constant dense<0.000000e+00> : vector<16x128xf32>
    %255 = tpu.matmul %253, %254, %cst_95 {dimension_numbers = #tpu.dot_dimension_numbers<[1], [0], [0], [1], [0, 0, 1, 1], [], []>} : vector<16x32xf32>, vector<32x128xf32>, vector<16x128xf32> -> vector<16x128xf32>
    %c0_96 = arith.constant 0 : index
    %c0_97 = arith.constant 0 : index
    %256 = vector.load %arg14[%c0_96, %c0_97] : memref<1x128xf32, #tpu.memory_space<vmem>>, vector<1x128xf32>
    %257 = vector.broadcast %256 : vector<1x128xf32> to vector<16x128xf32>
    %258 = arith.addf %255, %257 : vector<16x128xf32>
    %259 = vector.shape_cast %258 : vector<16x128xf32> to vector<2x8x128xf32>
    %c0_98 = arith.constant 0 : index
    %c0_99 = arith.constant 0 : index
    %c0_100 = arith.constant 0 : index
    %260 = vector.load %arg15[%c0_98, %c0_99, %c0_100] : memref<2x8x128xf32, #tpu.memory_space<vmem>>, vector<2x8x128xf32>
    tpu.vector_store %arg15[%c0_98, %c0_99, %c0_100], %259 {strides = array<i32>} : memref<2x8x128xf32, #tpu.memory_space<vmem>>, vector<2x8x128xf32>,
    return
  }
  func.func @transform_0(%arg0: i32) -> (i32, i32, i32) {
    %c0_i32 = arith.constant 0 : i32
    %c0_i32_0 = arith.constant 0 : i32
    %c0_i32_1 = arith.constant 0 : i32
    return %arg0, %c0_i32, %c0_i32_0 : i32, i32, i32
  }
  func.func @transform_1(%arg0: i32) -> (i32, i32) {
    %c0_i32 = arith.constant 0 : i32
    %c0_i32_0 = arith.constant 0 : i32
    %c0_i32_1 = arith.constant 0 : i32
    return %c0_i32, %c0_i32_0 : i32, i32
  }
  func.func @transform_2(%arg0: i32) -> (i32, i32) {
    %c0_i32 = arith.constant 0 : i32
    %c0_i32_0 = arith.constant 0 : i32
    %c0_i32_1 = arith.constant 0 : i32
    return %c0_i32, %c0_i32_0 : i32, i32
  }
  func.func @transform_3(%arg0: i32) -> (i32, i32) {
    %c0_i32 = arith.constant 0 : i32
    %c0_i32_0 = arith.constant 0 : i32
    %c0_i32_1 = arith.constant 0 : i32
    return %c0_i32, %c0_i32_0 : i32, i32
  }
  func.func @transform_4(%arg0: i32) -> (i32, i32, i32) {
    %c0_i32 = arith.constant 0 : i32
    %c0_i32_0 = arith.constant 0 : i32
    %c0_i32_1 = arith.constant 0 : i32
    %c0_i32_2 = arith.constant 0 : i32
    return %c0_i32, %c0_i32_0, %c0_i32_1 : i32, i32, i32
  }
  func.func @transform_5(%arg0: i32) -> (i32, i32) {
    %c0_i32 = arith.constant 0 : i32
    %c0_i32_0 = arith.constant 0 : i32
    %c0_i32_1 = arith.constant 0 : i32
    return %c0_i32, %c0_i32_0 : i32, i32
  }
  func.func @transform_6(%arg0: i32) -> (i32, i32) {
    %c0_i32 = arith.constant 0 : i32
    %c0_i32_0 = arith.constant 0 : i32
    %c0_i32_1 = arith.constant 0 : i32
    return %c0_i32, %c0_i32_0 : i32, i32
  }
  func.func @transform_7(%arg0: i32) -> (i32, i32) {
    %c0_i32 = arith.constant 0 : i32
    %c0_i32_0 = arith.constant 0 : i32
    %c0_i32_1 = arith.constant 0 : i32
    return %c0_i32, %c0_i32_0 : i32, i32
  }
  func.func @transform_8(%arg0: i32) -> (i32, i32) {
    %c0_i32 = arith.constant 0 : i32
    %c0_i32_0 = arith.constant 0 : i32
    %c0_i32_1 = arith.constant 0 : i32
    return %c0_i32, %c0_i32_0 : i32, i32
  }
  func.func @transform_9(%arg0: i32) -> (i32, i32) {
    %c0_i32 = arith.constant 0 : i32
    %c0_i32_0 = arith.constant 0 : i32
    %c0_i32_1 = arith.constant 0 : i32
    return %c0_i32, %c0_i32_0 : i32, i32
  }
  func.func @transform_10(%arg0: i32) -> (i32, i32) {
    %c0_i32 = arith.constant 0 : i32
    %c0_i32_0 = arith.constant 0 : i32
    %c0_i32_1 = arith.constant 0 : i32
    return %c0_i32, %c0_i32_0 : i32, i32
  }
  func.func @transform_11(%arg0: i32) -> (i32, i32) {
    %c0_i32 = arith.constant 0 : i32
    %c0_i32_0 = arith.constant 0 : i32
    %c0_i32_1 = arith.constant 0 : i32
    return %c0_i32, %c0_i32_0 : i32, i32
  }
  func.func @transform_12(%arg0: i32) -> (i32, i32) {
    %c0_i32 = arith.constant 0 : i32
    %c0_i32_0 = arith.constant 0 : i32
    %c0_i32_1 = arith.constant 0 : i32
    return %c0_i32, %c0_i32_0 : i32, i32
  }
  func.func @transform_13(%arg0: i32) -> (i32, i32) {
    %c0_i32 = arith.constant 0 : i32
    %c0_i32_0 = arith.constant 0 : i32
    %c0_i32_1 = arith.constant 0 : i32
    return %c0_i32, %c0_i32_0 : i32, i32
  }
  func.func @transform_14(%arg0: i32) -> (i32, i32, i32) {
    %c0_i32 = arith.constant 0 : i32
    %c0_i32_0 = arith.constant 0 : i32
    %c0_i32_1 = arith.constant 0 : i32
    return %arg0, %c0_i32, %c0_i32_0 : i32, i32, i32
  }
}

</mosaic_0001>

<bundles_post_ra>
// kernel: tpu_custom_call.1
= control target key start
LH: loop header
LB: loop body
LE: loop exit
PB: predicated region body
PF: predicated region fallthrough
CT: control target
= control target key end

     0   :  { %vm52_vm0 = vcmask 261120   ;;  %s2394_s0 = inlined_call_operand.vmem [shape: f32[2,8,32], index: 0, kind: input, shape index: {}]   ;;  %s2395_s1 = inlined_call_operand.vmem [shape: f32[1,32], index: 1, kind: input, shape index: {}]   ;;  %s2396_s2 = inlined_call_operand.vmem [shape: f32[1,32], index: 2, kind: input, shape index: {}]   ;;  %s2397_s3 = inlined_call_operand.vmem [shape: f32[32,96], index: 3, kind: input, shape index: {}]   ;;  %s2398_s4 = inlined_call_operand.vmem [shape: f32[8,4,32], index: 4, kind: input, shape index: {}]   ;;  %s2399_s5 = inlined_call_operand.vmem [shape: f32[1,32], index: 5, kind: input, shape index: {}]   ;;  %s2400_s6 = inlined_call_operand.vmem [shape: f32[1,32], index: 6, kind: input, shape index: {}]   ;;  %s2401_s7 = inlined_call_operand.vmem [shape: f32[1,32], index: 7, kind: input, shape index: {}]   ;;  %s2402_s8 = inlined_call_operand.vmem [shape: f32[32,128], index: 8, kind: input, shape index: {}]   ;;  %s2403_s9 = inlined_call_operand.vmem [shape: f32[1,128], index: 9, kind: input, shape index: {}]   ;;  %s2404_s10 = inlined_call_operand.vmem [shape: f32[128,32], index: 10, kind: input, shape index: {}]   ;;  %s2405_s11 = inlined_call_operand.vmem [shape: f32[1,32], index: 11, kind: input, shape index: {}]   ;;  %s2406_s12 = inlined_call_operand.vmem [shape: f32[32,128], index: 12, kind: input, shape index: {}]   ;;  %s2407_s13 = inlined_call_operand.vmem [shape: f32[1,128], index: 13, kind: input, shape index: {}]   ;;  %s2408_s14 = inlined_call_operand.hbm [shape: f32[2,8,128], index: 14, kind: output, shape index: {}]  }
   0x1   :  { %v48_v0 = vld [vmem:[%s2394_s0] sm:$0xff] }
   0x2   :  { %v53_v1 = vsel %vm52_vm0, %v48_v0, 0.0 }
   0x3   :  { %54 = vadd.xlane.f32.xlu0 %v53_v1 }
   0x4   :  { %19 = vsyncpa [#allocation3], 0  ;;  %v49_v2 = vld [vmem:[%s2394_s0 + $0x8] sm:$0xff]  ;;  %v1900_v4 = vmov 32.0   ;;  %v117_v21 = vld [vmem:[%s2397_s3 + $0x18] sm:$0xff]  ;;  %s1903_s28 = smov 124  }
   0x5   :  { %v56_v3 = vsel %vm52_vm0, %v49_v2, 0.0  ;;  %1798 = vrcp.f32 %v1900_v4  ;;  %136 = vmatpush.msra.mxu0 %v117_v21  ;;  %v116_v22 = vld [vmem:[%s2397_s3 + $0x10] sm:$0xff]  ;;  %v115_v23 = vld [vmem:[%s2397_s3 + $0x8] sm:$0xff]  ;;  %v114_v24 = vld [vmem:[%s2397_s3] sm:$0xff]  ;;  %vm150_vm8 = vcmask 31744   ;;  %vm202_vm9 = vcmask 64512  }
   0x6   :  { %v1790_v39 = vld [vmem:[%s2395_s1] ss:$0 sm:$0xff]  ;;  %s1901_s1 = smov 92   ;;  %s1904_s29 = smov 64   ;;  %vm416_vm10 = vcmask 1043456  }
   0x7   :  { %137 = vmatpush.msra.mxu0 %v116_v22  ;;  %v1791_v43 = vld [vmem:[%s2396_s2] ss:$0 sm:$0xff]  ;;  %s1902_s2 = smov 96   ;;  %s1905_s30 = smov 60  }
   0x8   :  { %s1906_s15 = smov 88   ;;  %s1907_s16 = smov 120  }
   0x9   :  { %138 = vmatpush.msra.mxu0 %v115_v23  ;;  %s1908_s17 = smov 84   ;;  %s1909_s18 = smov 116  }
   0xa   :  { %s1910_s21 = smov 56   ;;  %s1911_s24 = smov 112  }
   0xb   :  { %57 = vadd.xlane.f32.xlu0 %v56_v3  ;;  %v1799_v5 = vpop.eup %1798  ;;  %139 = vmatpush.msra.mxu0 %v114_v24  ;;  %s1912_s3 = smov 80   ;;  %s1913_s25 = smov 52  }
   0xc   :  { %v60_v6 = vmul.f32 32.0, %v1799_v5  ;;  %vm64_vm1 = vweird.f32 %v1799_v5  ;;  %s1919_s19 = smov 44   ;;  %s1920_s20 = smov 68  }
   0xd   :  { %s1921_s23 = smov 100   ;;  %s1923_s26 = smov 36  }
   0xe   :  { %v61_v7 = vsub.f32 1.0, %v60_v6 }
  0x10   :  { %v62_v8 = vmul.f32 %v1799_v5, %v61_v7 }
  0x12   :  { %v63_v9 = vadd.f32 %v1799_v5, %v62_v8 }
  0x14   :  { %v2010_v10 = vsel %vm64_vm1, %v1799_v5, %v63_v9 }
  0x76   :  { %v55_v11 = vpop.xlane.xlu0 %54 }
  0x77   :  { %v66_v12 = vmul.f32 %v2010_v10, %v55_v11 }
  0x79   :  { %v68_v13 = vsub.f32 %v48_v0, %v66_v12 }
  0x7b   :  { %v70_v14 = vmul.f32 %v68_v13, %v68_v13 }
  0x7d   :  { %v72_v15 = vsel %vm52_vm0, %v70_v14, 0.0 }
  0x7e   :  { %73 = vadd.xlane.f32.xlu1 %v72_v15  ;;  %v58_v16 = vpop.xlane.xlu0 %57 }
  0x7f   :  { %v67_v17 = vmul.f32 %v2010_v10, %v58_v16 }
  0x81   :  { %v69_v18 = vsub.f32 %v49_v2, %v67_v17 }
  0x83   :  { %v71_v19 = vmul.f32 %v69_v18, %v69_v18 }
  0x85   :  { %v75_v20 = vsel %vm52_vm0, %v71_v19, 0.0 }
  0x86   :  { %76 = vadd.xlane.f32.xlu1 %v75_v20 }
  0xf1   :  { %v74_v25 = vpop.xlane.xlu1 %73 }
  0xf2   :  { %v78_v26 = vmul.f32 %v74_v25, %v2010_v10 }
  0xf4   :  { %v80_v27 = vadd.f32 1e-05, %v78_v26 }
  0xf6   :  { %1800 = vrsqrt.f32 %v80_v27  ;;  %vm88_vm3 = vweird.f32 %v80_v27 }
  0xf9   :  { %v77_v28 = vpop.xlane.xlu1 %76 }
  0xfa   :  { %v79_v29 = vmul.f32 %v77_v28, %v2010_v10 }
  0xfc   :  { %v1801_v30 = vpop.eup %1800  ;;  %v81_v31 = vadd.f32 1e-05, %v79_v29 }
  0xfd   :  { %v83_v32 = vmul.f32 %v1801_v30, %v80_v27  ;;  %vm89_vm2 = vweird.f32 %v1801_v30 }
  0xfe   :  { %1802 = vrsqrt.f32 %v81_v31  ;;  %vm90_vm4 = vmor %vm88_vm3, %vm89_vm2  ;;  %vm98_vm5 = vweird.f32 %v81_v31 }
  0xff   :  { %v84_v33 = vmul.f32 %v1801_v30, %v83_v32 }
 0x101   :  { %v85_v34 = vmul.f32 0.5, %v84_v33 }
 0x103   :  { %v86_v35 = vsub.f32 1.5, %v85_v34  ;;  %v277_v34 = vld [vmem:[%s2398_s4] sm:$0xf] }
 0x104   :  { %v1803_v36 = vpop.eup %1802  ;;  %1696 = vmatpush.msk.msrb.mxu0 %vm416_vm10, %v277_v34  ;;  %v1715_v34 = vld [vmem:[%s2398_s4 + $0xc] sm:$0xf] }
 0x105   :  { %v87_v37 = vmul.f32 %v1801_v30, %v86_v35  ;;  %v93_v38 = vmul.f32 %v1803_v36, %v81_v31  ;;  %vm99_vm6 = vweird.f32 %v1803_v36 }
 0x106   :  { %vm100_vm7 = vmor %vm98_vm5, %vm99_vm6 }
 0x107   :  { %v91_v40 = vsel %vm90_vm4, %v1801_v30, %v87_v37  ;;  %v94_v41 = vmul.f32 %v1803_v36, %v93_v38 }
 0x108   :  { %v102_v42 = vmul.f32 %v91_v40, %v68_v13 }
 0x109   :  { %v95_v44 = vmul.f32 0.5, %v94_v41 }
 0x10a   :  { %v107_v45 = vmul.f32 %v1790_v39, %v102_v42 }
 0x10b   :  { %v96_v46 = vsub.f32 1.5, %v95_v44 }
 0x10c   :  { %v112_v47 = vadd.f32 %v1791_v43, %v107_v45 }
 0x10d   :  { %v97_v48 = vmul.f32 %v1803_v36, %v96_v46 }
 0x10e   :  { %1678 = vmatmul.msk.f32.vlgmr.msra.gmra.mxu0 %vm52_vm0, %v112_v47 }
 0x10f   :  { %v101_v49 = vsel %vm100_vm7, %v1803_v36, %v97_v48 }
 0x110   :  { %v103_v50 = vmul.f32 %v101_v49, %v69_v18 }
 0x112   :  { %v108_v51 = vmul.f32 %v1790_v39, %v103_v50 }
 0x114   :  { %v113_v52 = vadd.f32 %v1791_v43, %v108_v51 }
 0x116   :  { %1679 = vmatmul.msk.f32.gmra.mxu0 %vm52_vm0, %v113_v52  ;;  %v1692_v52 = vld [vmem:[%s2398_s4 + $0x4] sm:$0xf] }
 0x18b   :  { %v2038_v53 = vpop.f32.mrf.mxu0 }
 0x18c   :  { %280 = vrot.lane.b32.xlu0 %v2038_v53, %s1901_s1  ;;  %148 = vrot.lane.b32.xlu2 %v2038_v53, %s1902_s2 }
 0x18d   :  { %278 = vrot.lane.b32.xlu1 %v2038_v53, %s1903_s28 }
 0x193   :  { %v2043_v54 = vpop.f32.mrf.mxu0 }
 0x194   :  { %176 = vrot.lane.b32.xlu2 %v2043_v54, %s1902_s2 }
 0x19c   :  { %308 = vrot.lane.b32.xlu2 %v2043_v54, %s1901_s1 }
 0x1a4   :  { %306 = vrot.lane.b32.xlu2 %v2043_v54, %s1903_s28  ;;  %s1914_s28 = smov 48  }
 0x1e6   :  { %v149_v55 = vpop.permute.xlu2 %148 }
 0x1e7   :  { %1680 = vmatpush.xpose.msk.msra.mxu1 %vm150_vm8, %v149_v55 }
 0x1ea   :  { %1681 = vmatmul.msk.f32.vlgmr.msra.gmra.mxu1 %vm150_vm8, %v2038_v53 }
 0x1ee   :  { %v177_v56 = vpop.permute.xlu2 %176 }
 0x1ef   :  { %1682 = vmatpush.xpose.msk.msra.mxu3 %vm150_vm8, %v177_v56 }
 0x1f2   :  { %1683 = vmatmul.msk.f32.vlgmr.msra.gmra.mxu3 %vm150_vm8, %v2043_v54 }
 0x1f6   :  { %v309_v57 = vpop.permute.xlu2 %308 }
 0x1f7   :  { %1688 = vmatpush.xpose.msk.msra.mxu2 %vm150_vm8, %v309_v57 }
 0x1fb   :  { %1693 = vmatpush.msk.msrb.mxu2 %vm416_vm10, %v1692_v52 }
 0x1fe   :  { %v307_v58 = vpop.permute.xlu2 %306  ;;  %v281_v59 = vpop.permute.xlu0 %280 }
 0x1ff   :  { %1686 = vmatpush.xpose.msk.msrb.mxu1 %vm150_vm8, %v281_v59  ;;  %1689 = vmatmul.msk.f32.vlgmr.msra.gmra.mxu2 %vm150_vm8, %v307_v58  ;;  %v279_v60 = vpop.permute.xlu1 %278 }
 0x202   :  { %1687 = vmatmul.msk.f32.vlgmr.msrb.gmra.mxu1 %vm150_vm8, %v279_v60 }
 0x267   :  { %v172_v61 = vpop.f32.mrf.mxu1 }
 0x268   :  { %v203_v62 = vsel %vm202_vm9, %v172_v61, -inf }
 0x269   :  { %204 = vmax.xlane.f32.xlu2 %v203_v62 }
 0x275   :  { %v199_v63 = vpop.f32.mrf.mxu3 }
 0x276   :  { %v206_v0 = vsel %vm202_vm9, %v199_v63, -inf }
 0x277   :  { %207 = vmax.xlane.f32.xlu0 %v206_v0 }
 0x27f   :  { %v303_v8 = vpop.f32.mrf.mxu1 }
 0x280   :  { %v334_v11 = vsel %vm202_vm9, %v303_v8, -inf }
 0x282   :  { %v331_v13 = vpop.f32.mrf.mxu2 }
 0x283   :  { %v337_v15 = vsel %vm202_vm9, %v331_v13, -inf }
 0x28b   :  { %225 = vrot.lane.b32.xlu0 %v2038_v53, %s1904_s29 }
 0x2dc   :  { %v205_v1 = vpop.xlane.xlu2 %204 }
 0x2dd   :  { %v209_v2 = vsub.f32 %v172_v61, %v205_v1 }
 0x2df   :  { %v211_v3 = vmul.f32 1.442695, %v209_v2 }
 0x2e1   :  { %1804 = vpow2.f32 %v211_v3 }
 0x2e7   :  { %v1805_v4 = vpop.eup %1804 }
 0x2e8   :  { %v215_v5 = vsel %vm202_vm9, %v1805_v4, 0.0 }
 0x2e9   :  { %216 = vadd.xlane.f32.xlu1 %v215_v5 }
 0x2ea   :  { %v208_v6 = vpop.xlane.xlu0 %207 }
 0x2eb   :  { %v210_v7 = vsub.f32 %v199_v63, %v208_v6 }
 0x2ed   :  { %v213_v9 = vmul.f32 1.442695, %v210_v7 }
 0x2ef   :  { %1806 = vpow2.f32 %v213_v9 }
 0x2f1   :  { %335 = vmax.xlane.f32.xlu1 %v334_v11 }
 0x2f5   :  { %v1807_v12 = vpop.eup %1806 }
 0x2f6   :  { %v218_v14 = vsel %vm202_vm9, %v1807_v12, 0.0 }
 0x2f7   :  { %219 = vadd.xlane.f32.xlu2 %v218_v14 }
 0x2f9   :  { %338 = vmax.xlane.f32.xlu1 %v337_v15 }
 0x2fd   :  { %v226_v16 = vpop.permute.xlu0 %225 }
 0x2fe   :  { %246 = vmatpush.msrb.mxu3 %v226_v16 }
 0x30f   :  { %251 = vrot.lane.b32.xlu2 %v2043_v54, %s1904_s29  ;;  %s1915_s29 = smov 76  }
 0x312   :  { %356 = vrot.lane.b32.xlu1 %v2038_v53, %s1905_s30 }
 0x317   :  { %477 = vrot.lane.b32.xlu2 %v2038_v53, %s1906_s15 }
 0x31a   :  { %382 = vrot.lane.b32.xlu1 %v2043_v54, %s1905_s30  ;;  %s1916_s30 = smov 108  }
 0x31f   :  { %475 = vrot.lane.b32.xlu2 %v2038_v53, %s1907_s16 }
 0x322   :  { %505 = vrot.lane.b32.xlu1 %v2043_v54, %s1906_s15 }
 0x32a   :  { %643 = vrot.lane.b32.xlu1 %v2038_v53, %s1908_s17 }
 0x332   :  { %641 = vrot.lane.b32.xlu1 %v2038_v53, %s1909_s18 }
 0x35c   :  { %v217_v17 = vpop.xlane.xlu1 %216 }
 0x35d   :  { %1808 = vrcp.f32 %v217_v17 }
 0x363   :  { %v1809_v18 = vpop.eup %1808 }
 0x364   :  { %v336_v19 = vpop.xlane.xlu1 %335  ;;  %v223_v20 = vmul.f32 %v1809_v18, %v1805_v4 }
 0x365   :  { %v340_v21 = vsub.f32 %v303_v8, %v336_v19 }
 0x366   :  { %1684 = vmatmul.msk.f32.vlgmr.msrb.gmra.mxu3 %vm202_vm9, %v223_v20 }
 0x367   :  { %v342_v22 = vmul.f32 1.442695, %v340_v21  ;;  %v1705_v21 = vld [vmem:[%s2398_s4 + $0x8] sm:$0xf] }
 0x368   :  { %1706 = vmatpush.msk.msra.mxu2 %vm416_vm10, %v1705_v21 }
 0x369   :  { %1810 = vpow2.f32 %v342_v22 }
 0x36a   :  { %v220_v23 = vpop.xlane.xlu2 %219 }
 0x36b   :  { %1812 = vrcp.f32 %v220_v23 }
 0x36c   :  { %v339_v24 = vpop.xlane.xlu1 %338 }
 0x36d   :  { %v341_v25 = vsub.f32 %v331_v13, %v339_v24 }
 0x36f   :  { %v1811_v26 = vpop.eup %1810  ;;  %v344_v27 = vmul.f32 1.442695, %v341_v25 }
 0x370   :  { %v346_v28 = vsel %vm202_vm9, %v1811_v26, 0.0 }
 0x371   :  { %v1813_v29 = vpop.eup %1812  ;;  %1814 = vpow2.f32 %v344_v27  ;;  %347 = vadd.xlane.f32.xlu0 %v346_v28 }
 0x372   :  { %v224_v30 = vmul.f32 %v1813_v29, %v1807_v12  ;;  %v252_v31 = vpop.permute.xlu2 %251 }
 0x373   :  { %272 = vmatpush.msra.mxu3 %v252_v31 }
 0x374   :  { %1685 = vmatmul.msk.f32.vlgmr.msra.gmra.mxu3 %vm202_vm9, %v224_v30 }
 0x377   :  { %v1815_v32 = vpop.eup %1814 }
 0x378   :  { %v349_v33 = vsel %vm202_vm9, %v1815_v32, 0.0 }
 0x379   :  { %350 = vadd.xlane.f32.xlu2 %v349_v33 }
 0x37a   :  { %v478_v36 = vpop.permute.xlu2 %477 }
 0x382   :  { %v476_v40 = vpop.permute.xlu2 %475 }
 0x384   :  { %v357_v35 = vpop.permute.xlu1 %356 }
 0x385   :  { %503 = vrot.lane.b32.xlu0 %v2043_v54, %s1907_s16  ;;  %377 = vmatpush.msrb.mxu3 %v357_v35 }
 0x387   :  { %1699 = vmatpush.xpose.msk.msra.mxu3 %vm150_vm8, %v478_v36 }
 0x38c   :  { %v383_v37 = vpop.permute.xlu1 %382 }
 0x38d   :  { %403 = vmatpush.msra.mxu1 %v383_v37 }
 0x391   :  { %553 = vrot.lane.b32.xlu2 %v2038_v53, %s1910_s21 }
 0x394   :  { %v506_v38 = vpop.permute.xlu1 %505 }
 0x395   :  { %1701 = vmatpush.xpose.msk.msrb.mxu1 %vm150_vm8, %v506_v38 }
 0x399   :  { %669 = vrot.lane.b32.xlu2 %v2043_v54, %s1909_s18  ;;  %s1918_s18 = smov 104  }
 0x39c   :  { %v644_v39 = vpop.permute.xlu1 %643 }
 0x39d   :  { %1709 = vmatpush.xpose.msk.msra.mxu0 %vm150_vm8, %v644_v39 }
 0x3a4   :  { %v642_v51 = vpop.permute.xlu1 %641 }
 0x3e4   :  { %v348_v41 = vpop.xlane.xlu0 %347 }
 0x3e5   :  { %1816 = vrcp.f32 %v348_v41 }
 0x3e9   :  { %v248_v42 = vpop.f32.mrf.mxu3 }
 0x3ea   :  { %1697 = vmatmul.msk.f32.vlgmr.msrb.gmra.mxu0 %vm150_vm8, %v248_v42 }
 0x3eb   :  { %v1817_v43 = vpop.eup %1816 }
 0x3ec   :  { %v354_v44 = vmul.f32 %v1817_v43, %v1811_v26  ;;  %v351_v45 = vpop.xlane.xlu2 %350 }
 0x3ed   :  { %1818 = vrcp.f32 %v351_v45 }
 0x3ee   :  { %1690 = vmatmul.msk.f32.vlgmr.msrb.gmra.mxu3 %vm202_vm9, %v354_v44 }
 0x3f3   :  { %v1819_v46 = vpop.eup %1818 }
 0x3f4   :  { %v355_v47 = vmul.f32 %v1819_v46, %v1815_v32  ;;  %v554_v48 = vpop.permute.xlu2 %553 }
 0x3f5   :  { %574 = vmatpush.msrb.mxu3 %v554_v48 }
 0x3f6   :  { %1691 = vmatmul.msk.f32.vlgmr.msra.gmra.mxu1 %vm202_vm9, %v355_v47  ;;  %1700 = vmatmul.msk.f32.vlgmr.msra.gmra.mxu3 %vm150_vm8, %v476_v40 }
 0x3f7   :  { %v274_v49 = vpop.f32.mrf.mxu3  ;;  %v504_v50 = vpop.permute.xlu0 %503 }
 0x3f8   :  { %1698 = vmatmul.msk.f32.gmra.mxu0 %vm150_vm8, %v274_v49 }
 0x3fc   :  { %v670_v1 = vpop.permute.xlu2 %669 }
 0x3fe   :  { %1702 = vmatmul.msk.f32.vlgmr.msrb.gmra.mxu1 %vm150_vm8, %v504_v50 }
 0x400   :  { %1710 = vmatmul.msk.f32.vlgmr.msra.gmra.mxu0 %vm150_vm8, %v642_v51 }
 0x467   :  { %v2104_v55 = vpop.f32.mrf.mxu0 }
 0x471   :  { %v379_v56 = vpop.f32.mrf.mxu3 }
 0x472   :  { %1694 = vmatmul.msk.f32.vlgmr.msrb.gmra.mxu2 %vm150_vm8, %v379_v56 }
 0x473   :  { %v405_v57 = vpop.f32.mrf.mxu1 }
 0x475   :  { %v2107_v58 = vpop.f32.mrf.mxu0 }
 0x479   :  { %v500_v59 = vpop.f32.mrf.mxu3 }
 0x47a   :  { %1695 = vmatmul.msk.f32.gmra.mxu2 %vm150_vm8, %v405_v57  ;;  %v531_v60 = vsel %vm202_vm9, %v500_v59, -inf }
 0x47b   :  { %532 = vmax.xlane.f32.xlu1 %v531_v60  ;;  %v528_v61 = vpop.f32.mrf.mxu1 }
 0x47c   :  { %v534_v62 = vsel %vm202_vm9, %v528_v61, -inf }
 0x47d   :  { %v666_v63 = vpop.f32.mrf.mxu0  ;;  %535 = vmax.xlane.f32.xlu0 %v534_v62 }
 0x47e   :  { %v697_v0 = vsel %vm202_vm9, %v666_v63, -inf }
 0x47f   :  { %698 = vmax.xlane.f32.xlu2 %v697_v0 }
 0x494   :  { %671 = vrot.lane.b32.xlu1 %v2043_v54, %s1908_s17  ;;  %s1917_s17 = smov 72  }
 0x497   :  { %579 = vrot.lane.b32.xlu2 %v2043_v54, %s1910_s21 }
 0x49c   :  { %807 = vrot.lane.b32.xlu1 %v2038_v53, %s1911_s24 }
 0x4ee   :  { %v533_v2 = vpop.xlane.xlu1 %532 }
 0x4ef   :  { %v537_v3 = vsub.f32 %v500_v59, %v533_v2 }
 0x4f0   :  { %v536_v4 = vpop.xlane.xlu0 %535 }
 0x4f1   :  { %v539_v5 = vmul.f32 1.442695, %v537_v3  ;;  %v538_v6 = vsub.f32 %v528_v61, %v536_v4 }
 0x4f2   :  { %v699_v7 = vpop.xlane.xlu2 %698 }
 0x4f3   :  { %1820 = vpow2.f32 %v539_v5  ;;  %v541_v8 = vmul.f32 1.442695, %v538_v6  ;;  %v703_v9 = vsub.f32 %v666_v63, %v699_v7 }
 0x4f5   :  { %1822 = vpow2.f32 %v541_v8  ;;  %v705_v11 = vmul.f32 1.442695, %v703_v9  ;;  %v437_v42 = vpop.f32.mrf.mxu2  ;;  %v1725_v8 = vld [vmem:[%s2398_s4 + $0x10] sm:$0xf] }
 0x4f6   :  { %v470_v47 = vadd.f32 %v2104_v55, %v437_v42 }
 0x4f7   :  { %1824 = vpow2.f32 %v705_v11 }
 0x4f9   :  { %v1821_v12 = vpop.eup %1820 }
 0x4fa   :  { %v580_v13 = vpop.permute.xlu2 %579  ;;  %v543_v14 = vsel %vm202_vm9, %v1821_v12, 0.0 }
 0x4fb   :  { %v1823_v15 = vpop.eup %1822  ;;  %600 = vmatpush.msra.mxu1 %v580_v13  ;;  %544 = vadd.xlane.f32.xlu2 %v543_v14 }
 0x4fc   :  { %v546_v16 = vsel %vm202_vm9, %v1823_v15, 0.0 }
 0x4fd   :  { %547 = vadd.xlane.f32.xlu0 %v546_v16  ;;  %v1825_v17 = vpop.eup %1824  ;;  %v2153_v43 = vpop.f32.mrf.mxu2 }
 0x4fe   :  { %v709_v18 = vsel %vm202_vm9, %v1825_v17, 0.0 }
 0x505   :  { %710 = vadd.xlane.f32.xlu0 %v709_v18 }
 0x506   :  { %v672_v19 = vpop.permute.xlu1 %671 }
 0x507   :  { %1711 = vmatpush.xpose.msk.msra.mxu3 %vm150_vm8, %v672_v19 }
 0x50e   :  { %v808_v33 = vpop.permute.xlu1 %807 }
 0x513   :  { %809 = vrot.lane.b32.xlu2 %v2038_v53, %s1912_s3 }
 0x519   :  { %719 = vrot.lane.b32.xlu0 %v2038_v53, %s1913_s25 }
 0x521   :  { %837 = vrot.lane.b32.xlu0 %v2043_v54, %s1912_s3  ;;  %s1926_s3 = smov 8  }
 0x56e   :  { %v545_v20 = vpop.xlane.xlu2 %544 }
 0x56f   :  { %1826 = vrcp.f32 %v545_v20 }
 0x570   :  { %v548_v22 = vpop.xlane.xlu0 %547 }
 0x571   :  { %1828 = vrcp.f32 %v548_v22 }
 0x575   :  { %v1827_v23 = vpop.eup %1826 }
 0x576   :  { %v551_v24 = vmul.f32 %v1827_v23, %v1821_v12  ;;  %v810_v31 = vpop.permute.xlu2 %809 }
 0x577   :  { %v1829_v25 = vpop.eup %1828 }
 0x578   :  { %v552_v26 = vmul.f32 %v1829_v25, %v1823_v15  ;;  %1703 = vmatmul.msk.f32.vlgmr.msrb.gmra.mxu3 %vm202_vm9, %v551_v24  ;;  %v711_v27 = vpop.xlane.xlu0 %710 }
 0x579   :  { %1830 = vrcp.f32 %v711_v27  ;;  %1716 = vmatpush.msk.msrb.mxu3 %vm416_vm10, %v1715_v34 }
 0x57a   :  { %1704 = vmatmul.msk.f32.vlgmr.msra.gmra.mxu1 %vm202_vm9, %v552_v26 }
 0x57f   :  { %v1831_v28 = vpop.eup %1830 }
 0x580   :  { %1712 = vmatmul.msk.f32.vlgmr.msra.gmra.mxu3 %vm150_vm8, %v670_v1  ;;  %v717_v29 = vmul.f32 %v1831_v28, %v1825_v17 }
 0x58b   :  { %v720_v30 = vpop.permute.xlu0 %719 }
 0x58c   :  { %740 = vmatpush.msrb.mxu1 %v720_v30 }
 0x58d   :  { %1713 = vmatmul.msk.f32.vlgmr.msrb.gmra.mxu1 %vm202_vm9, %v717_v29 }
 0x58e   :  { %1719 = vmatpush.xpose.msk.msra.mxu1 %vm150_vm8, %v810_v31 }
 0x593   :  { %v838_v32 = vpop.permute.xlu0 %837 }
 0x594   :  { %1721 = vmatpush.xpose.msk.msrb.mxu2 %vm150_vm8, %v838_v32 }
 0x595   :  { %1720 = vmatmul.msk.f32.vlgmr.msra.gmra.mxu1 %vm150_vm8, %v808_v33 }
 0x5f7   :  { %v602_v36 = vpop.f32.mrf.mxu1 }
 0x5fb   :  { %v576_v35 = vpop.f32.mrf.mxu3 }
 0x5fc   :  { %1707 = vmatmul.msk.f32.vlgmr.msra.gmra.mxu2 %vm150_vm8, %v576_v35 }
 0x5fd   :  { %1726 = vmatpush.msk.msra.mxu2 %vm416_vm10, %v1725_v8 }
 0x603   :  { %v694_v37 = vpop.f32.mrf.mxu3 }
 0x604   :  { %1708 = vmatmul.msk.f32.gmra.mxu2 %vm150_vm8, %v602_v36  ;;  %v700_v38 = vsel %vm202_vm9, %v694_v37, -inf }
 0x605   :  { %701 = vmax.xlane.f32.xlu2 %v700_v38 }
 0x60a   :  { %v742_v39 = vpop.f32.mrf.mxu1 }
 0x60b   :  { %1717 = vmatmul.msk.f32.vlgmr.msrb.gmra.mxu3 %vm150_vm8, %v742_v39 }
 0x612   :  { %v832_v40 = vpop.f32.mrf.mxu1 }
 0x613   :  { %v863_v41 = vsel %vm202_vm9, %v832_v40, -inf }
 0x614   :  { %864 = vmax.xlane.f32.xlu1 %v863_v41 }
 0x61d   :  { %745 = vrot.lane.b32.xlu2 %v2043_v54, %s1913_s25 }
 0x625   :  { %885 = vrot.lane.b32.xlu2 %v2038_v53, %s1914_s28 }
 0x62d   :  { %975 = vrot.lane.b32.xlu2 %v2038_v53, %s1915_s29 }
 0x635   :  { %1001 = vrot.lane.b32.xlu2 %v2043_v54, %s1916_s30 }
 0x678   :  { %v702_v44 = vpop.xlane.xlu2 %701 }
 0x679   :  { %v704_v45 = vsub.f32 %v694_v37, %v702_v44 }
 0x67b   :  { %v707_v46 = vmul.f32 1.442695, %v704_v45 }
 0x67d   :  { %1832 = vpow2.f32 %v707_v46 }
 0x67f   :  { %v633_v48 = vpop.f32.mrf.mxu2 }
 0x680   :  { %v2156_v49 = vadd.f32 %v633_v48, %v470_v47  ;;  %v746_v50 = vpop.permute.xlu2 %745 }
 0x681   :  { %766 = vmatpush.msrb.mxu0 %v746_v50  ;;  %v1735_v50 = vld [vmem:[%s2398_s4 + $0x14] sm:$0xf] }
 0x683   :  { %v1833_v51 = vpop.eup %1832 }
 0x684   :  { %v712_v52 = vsel %vm202_vm9, %v1833_v51, 0.0 }
 0x685   :  { %713 = vadd.xlane.f32.xlu0 %v712_v52 }
 0x687   :  { %v865_v56 = vpop.xlane.xlu1 %864  ;;  %v2178_v15 = vpop.f32.mrf.mxu2 }
 0x688   :  { %v869_v57 = vsub.f32 %v832_v40, %v865_v56  ;;  %v886_v59 = vpop.permute.xlu2 %885 }
 0x689   :  { %906 = vmatpush.msra.mxu0 %v886_v59 }
 0x68a   :  { %v871_v60 = vmul.f32 1.442695, %v869_v57 }
 0x68c   :  { %1834 = vpow2.f32 %v871_v60 }
 0x68e   :  { %v2190_v29 = vpop.f32.mrf.mxu3 }
 0x690   :  { %v976_v1 = vpop.permute.xlu2 %975 }
 0x692   :  { %v1835_v61 = vpop.eup %1834 }
 0x693   :  { %v875_v62 = vsel %vm202_vm9, %v1835_v61, 0.0 }
 0x694   :  { %876 = vadd.xlane.f32.xlu1 %v875_v62 }
 0x698   :  { %v1002_v11 = vpop.permute.xlu2 %1001 }
 0x699   :  { %973 = vrot.lane.b32.xlu0 %v2038_v53, %s1916_s30 }
 0x6ad   :  { %835 = vrot.lane.b32.xlu1 %v2043_v54, %s1911_s24  ;;  %s1922_s24 = smov 40  }
 0x6b5   :  { %1003 = vrot.lane.b32.xlu1 %v2043_v54, %s1915_s29 }
 0x6f8   :  { %v714_v55 = vpop.xlane.xlu0 %713 }
 0x6f9   :  { %1836 = vrcp.f32 %v714_v55 }
 0x6ff   :  { %v1837_v63 = vpop.eup %1836 }
 0x700   :  { %v718_v0 = vmul.f32 %v1837_v63, %v1833_v51 }
 0x702   :  { %1714 = vmatmul.msk.f32.vlgmr.msrb.gmra.mxu0 %vm202_vm9, %v718_v0 }
 0x703   :  { %1729 = vmatpush.xpose.msk.msrb.mxu0 %vm150_vm8, %v976_v1 }
 0x707   :  { %v877_v2 = vpop.xlane.xlu1 %876 }
 0x708   :  { %1838 = vrcp.f32 %v877_v2 }
 0x70b   :  { %v974_v5 = vpop.permute.xlu0 %973 }
 0x70e   :  { %v1839_v3 = vpop.eup %1838 }
 0x70f   :  { %v883_v4 = vmul.f32 %v1839_v3, %v1835_v61 }
 0x711   :  { %1723 = vmatmul.msk.f32.vlgmr.msra.gmra.mxu0 %vm202_vm9, %v883_v4 }
 0x719   :  { %1730 = vmatmul.msk.f32.vlgmr.msrb.gmra.mxu0 %vm150_vm8, %v974_v5 }
 0x71f   :  { %v836_v6 = vpop.permute.xlu1 %835 }
 0x720   :  { %1722 = vmatmul.msk.f32.vlgmr.msrb.gmra.mxu2 %vm150_vm8, %v836_v6 }
 0x727   :  { %v1004_v7 = vpop.permute.xlu1 %1003 }
 0x728   :  { %1731 = vmatpush.xpose.msk.msra.mxu3 %vm150_vm8, %v1004_v7 }
 0x72c   :  { %1736 = vmatpush.msk.msrb.mxu3 %vm416_vm10, %v1735_v50 }
 0x77f   :  { %v768_v9 = vpop.f32.mrf.mxu0 }
 0x780   :  { %1718 = vmatmul.msk.f32.gmra.mxu3 %vm150_vm8, %v768_v9 }
 0x788   :  { %1732 = vmatmul.msk.f32.vlgmr.msra.gmra.mxu3 %vm150_vm8, %v1002_v11 }
 0x78e   :  { %v908_v12 = vpop.f32.mrf.mxu0 }
 0x78f   :  { %1727 = vmatmul.msk.f32.vlgmr.msra.gmra.mxu2 %vm150_vm8, %v908_v12 }
 0x796   :  { %v998_v13 = vpop.f32.mrf.mxu0 }
 0x797   :  { %v1029_v14 = vsel %vm202_vm9, %v998_v13, -inf }
 0x798   :  { %1030 = vmax.xlane.f32.xlu1 %v1029_v14 }
 0x7a3   :  { %v860_v16 = vpop.f32.mrf.mxu2 }
 0x7a4   :  { %v866_v17 = vsel %vm202_vm9, %v860_v16, -inf }
 0x7a5   :  { %867 = vmax.xlane.f32.xlu0 %v866_v17 }
 0x7b1   :  { %911 = vrot.lane.b32.xlu1 %v2043_v54, %s1914_s28 }
 0x7b9   :  { %1141 = vrot.lane.b32.xlu0 %v2038_v53, %s1917_s17 }
 0x803   :  { %v2192_v30 = vpop.f32.mrf.mxu3 }
 0x80b   :  { %v1031_v18 = vpop.xlane.xlu1 %1030  ;;  %v1026_v31 = vpop.f32.mrf.mxu3 }
 0x80c   :  { %v1035_v19 = vsub.f32 %v998_v13, %v1031_v18  ;;  %v1032_v32 = vsel %vm202_vm9, %v1026_v31, -inf }
 0x80e   :  { %v1037_v20 = vmul.f32 1.442695, %v1035_v19 }
 0x810   :  { %1840 = vpow2.f32 %v1037_v20 }
 0x812   :  { %v2224_v7 = vpop.f32.mrf.mxu2 }
 0x816   :  { %v1841_v21 = vpop.eup %1840 }
 0x817   :  { %v1041_v22 = vsel %vm202_vm9, %v1841_v21, 0.0 }
 0x818   :  { %1042 = vadd.xlane.f32.xlu0 %v1041_v22  ;;  %v868_v23 = vpop.xlane.xlu0 %867 }
 0x819   :  { %v870_v24 = vsub.f32 %v860_v16, %v868_v23 }
 0x81b   :  { %v873_v25 = vmul.f32 1.442695, %v870_v24  ;;  %v1745_v24 = vld [vmem:[%s2398_s4 + $0x18] sm:$0xf] }
 0x81d   :  { %1842 = vpow2.f32 %v873_v25 }
 0x823   :  { %v1843_v26 = vpop.eup %1842  ;;  %v912_v27 = vpop.permute.xlu1 %911 }
 0x824   :  { %932 = vmatpush.msrb.mxu1 %v912_v27  ;;  %v878_v28 = vsel %vm202_vm9, %v1843_v26, 0.0 }
 0x825   :  { %879 = vadd.xlane.f32.xlu2 %v878_v28 }
 0x82b   :  { %v1142_v33 = vpop.permute.xlu0 %1141 }
 0x82c   :  { %1139 = vrot.lane.b32.xlu0 %v2038_v53, %s1918_s18 }
 0x834   :  { %1077 = vrot.lane.b32.xlu0 %v2043_v54, %s1919_s19 }
 0x83d   :  { %1051 = vrot.lane.b32.xlu2 %v2038_v53, %s1919_s19 }
 0x866   :  { %1033 = vmax.xlane.f32.xlu2 %v1032_v32 }
 0x87e   :  { %1167 = vrot.lane.b32.xlu2 %v2043_v54, %s1918_s18 }
 0x88b   :  { %v1043_v34 = vpop.xlane.xlu0 %1042 }
 0x898   :  { %v880_v35 = vpop.xlane.xlu2 %879 }
 0x899   :  { %1844 = vrcp.f32 %v880_v35 }
 0x89a   :  { %1846 = vrcp.f32 %v1043_v34 }
 0x89e   :  { %v1140_v36 = vpop.permute.xlu0 %1139 }
 0x89f   :  { %v1845_v37 = vpop.eup %1844 }
 0x8a0   :  { %v884_v38 = vmul.f32 %v1845_v37, %v1843_v26  ;;  %v1052_v39 = vpop.permute.xlu2 %1051  ;;  %v1847_v40 = vpop.eup %1846 }
 0x8a1   :  { %1072 = vmatpush.msra.mxu1 %v1052_v39  ;;  %v1049_v42 = vmul.f32 %v1847_v40, %v1841_v21 }
 0x8a2   :  { %1724 = vmatmul.msk.f32.vlgmr.msrb.gmra.mxu1 %vm202_vm9, %v884_v38 }
 0x8a3   :  { %1739 = vmatpush.xpose.msk.msrb.mxu1 %vm150_vm8, %v1142_v33 }
 0x8a6   :  { %v1078_v41 = vpop.permute.xlu0 %1077 }
 0x8a7   :  { %1098 = vmatpush.msra.mxu0 %v1078_v41 }
 0x8aa   :  { %1733 = vmatmul.msk.f32.vlgmr.msra.gmra.mxu1 %vm202_vm9, %v1049_v42 }
 0x8b2   :  { %1740 = vmatmul.msk.f32.vlgmr.msrb.gmra.mxu1 %vm150_vm8, %v1140_v36 }
 0x8d9   :  { %v1034_v44 = vpop.xlane.xlu2 %1033 }
 0x8da   :  { %v1036_v45 = vsub.f32 %v1026_v31, %v1034_v44 }
 0x8dc   :  { %v1039_v46 = vmul.f32 1.442695, %v1036_v45 }
 0x8de   :  { %1848 = vpow2.f32 %v1039_v46 }
 0x8e1   :  { %v1168_v55 = vpop.permute.xlu2 %1167 }
 0x8e4   :  { %v1849_v47 = vpop.eup %1848 }
 0x8e5   :  { %v1044_v48 = vsel %vm202_vm9, %v1849_v47, 0.0 }
 0x8e6   :  { %1045 = vadd.xlane.f32.xlu1 %v1044_v48 }
 0x8ff   :  { %1169 = vrot.lane.b32.xlu1 %v2043_v54, %s1917_s17 }
 0x907   :  { %1307 = vrot.lane.b32.xlu1 %v2038_v53, %s1920_s20 }
 0x90f   :  { %1333 = vrot.lane.b32.xlu1 %v2043_v54, %s1921_s23 }
 0x91f   :  { %v934_v51 = vpop.f32.mrf.mxu1 }
 0x920   :  { %1728 = vmatmul.msk.f32.gmra.mxu2 %vm150_vm8, %v934_v51 }
 0x927   :  { %v1074_v52 = vpop.f32.mrf.mxu1 }
 0x928   :  { %1737 = vmatmul.msk.f32.vlgmr.msrb.gmra.mxu3 %vm150_vm8, %v1074_v52 }
 0x92f   :  { %v1164_v56 = vpop.f32.mrf.mxu1 }
 0x930   :  { %v1195_v57 = vsel %vm202_vm9, %v1164_v56, -inf }
 0x931   :  { %1196 = vmax.xlane.f32.xlu0 %v1195_v57 }
 0x945   :  { %1217 = vrot.lane.b32.xlu0 %v2038_v53, %s1922_s24 }
 0x94d   :  { %1305 = vrot.lane.b32.xlu0 %v2038_v53, %s1921_s23 }
 0x959   :  { %v1046_v59 = vpop.xlane.xlu1 %1045 }
 0x95a   :  { %1850 = vrcp.f32 %v1046_v59 }
 0x960   :  { %v1851_v60 = vpop.eup %1850 }
 0x961   :  { %v1050_v61 = vmul.f32 %v1851_v60, %v1849_v47 }
 0x963   :  { %1734 = vmatmul.msk.f32.vlgmr.msra.gmra.mxu0 %vm202_vm9, %v1050_v61 }
 0x971   :  { %v1170_v62 = vpop.permute.xlu1 %1169 }
 0x972   :  { %1741 = vmatpush.xpose.msk.msrb.mxu2 %vm150_vm8, %v1170_v62 }
 0x975   :  { %1742 = vmatmul.msk.f32.vlgmr.msrb.gmra.mxu2 %vm150_vm8, %v1168_v55 }
 0x976   :  { %1746 = vmatpush.msk.msra.mxu2 %vm416_vm10, %v1745_v24 }
 0x979   :  { %v1308_v5 = vpop.permute.xlu1 %1307 }
 0x981   :  { %v1334_v17 = vpop.permute.xlu1 %1333 }
 0x9a3   :  { %v2226_v8 = vpop.f32.mrf.mxu2 }
 0x9a4   :  { %v1197_v63 = vpop.xlane.xlu0 %1196 }
 0x9a5   :  { %v1201_v0 = vsub.f32 %v1164_v56, %v1197_v63  ;;  %v805_v63 = vadd.f32 %v2190_v29, %v2156_v49  ;;  %v1872_v29 = vld [vmem:[%s2394_s0] sm:$0xff] }
 0x9a7   :  { %v1203_v1 = vmul.f32 1.442695, %v1201_v0  ;;  %v971_v0 = vadd.f32 %v2224_v7, %v805_v63 }
 0x9a9   :  { %1852 = vpow2.f32 %v1203_v1 }
 0x9ab   :  { %v1131_v25 = vpop.f32.mrf.mxu3 }
 0x9af   :  { %v1853_v2 = vpop.eup %1852 }
 0x9b0   :  { %v1207_v3 = vsel %vm202_vm9, %v1853_v2, 0.0 }
 0x9b1   :  { %1208 = vadd.xlane.f32.xlu2 %v1207_v3  ;;  %v1137_v3 = vadd.f32 %v1131_v25, %v971_v0 }
 0x9b7   :  { %v1218_v4 = vpop.permute.xlu0 %1217 }
 0x9b8   :  { %1238 = vmatpush.msrb.mxu0 %v1218_v4 }
 0x9ba   :  { %1749 = vmatpush.xpose.msk.msra.mxu0 %vm150_vm8, %v1308_v5 }
 0x9bf   :  { %v1306_v18 = vpop.permute.xlu0 %1305 }
 0x9c9   :  { %1335 = vrot.lane.b32.xlu2 %v2043_v54, %s1920_s20 }
 0x9e0   :  { %v1100_v6 = vpop.f32.mrf.mxu0 }
 0x9e1   :  { %1738 = vmatmul.msk.f32.gmra.mxu3 %vm150_vm8, %v1100_v6 }
 0x9f8   :  { %v1192_v9 = vpop.f32.mrf.mxu2 }
 0x9f9   :  { %v1198_v11 = vsel %vm202_vm9, %v1192_v9, -inf }
 0x9fa   :  { %1199 = vmax.xlane.f32.xlu2 %v1198_v11 }
 0xa24   :  { %v1209_v12 = vpop.xlane.xlu2 %1208 }
 0xa25   :  { %1854 = vrcp.f32 %v1209_v12  ;;  %v1792_v12 = vld [vmem:[%s2399_s5] ss:$0 sm:$0xff] }
 0xa2b   :  { %v1855_v13 = vpop.eup %1854 }
 0xa2c   :  { %v1215_v14 = vmul.f32 %v1855_v13, %v1853_v2  ;;  %v1336_v16 = vpop.permute.xlu2 %1335  ;;  %v473_v2 = vadd.f32 %v2107_v58, %v2153_v43 }
 0xa2d   :  { %1751 = vmatpush.xpose.msk.msra.mxu3 %vm150_vm8, %v1336_v16 }
 0xa2e   :  { %1743 = vmatmul.msk.f32.vlgmr.msrb.gmra.mxu0 %vm202_vm9, %v1215_v14  ;;  %v640_v4 = vadd.f32 %v2178_v15, %v473_v2  ;;  %v1794_v2 = vld [vmem:[%s2401_s7] ss:$0 sm:$0xff] }
 0xa30   :  { %1752 = vmatmul.msk.f32.vlgmr.msra.gmra.mxu3 %vm150_vm8, %v1334_v17 }
 0xa36   :  { %1750 = vmatmul.msk.f32.vlgmr.msra.gmra.mxu0 %vm150_vm8, %v1306_v18 }
 0xa64   :  { %v2238_v26 = vpop.f32.mrf.mxu3 }
 0xa6d   :  { %v1200_v19 = vpop.xlane.xlu2 %1199 }
 0xa6e   :  { %v1202_v20 = vsub.f32 %v1192_v9, %v1200_v19  ;;  %v806_v9 = vadd.f32 %v2192_v30, %v640_v4 }
 0xa70   :  { %v1205_v21 = vmul.f32 1.442695, %v1202_v20  ;;  %v972_v49 = vadd.f32 %v2226_v8, %v806_v9  ;;  %v1873_v8 = vld [vmem:[%s2394_s0 + $0x8] sm:$0xff] }
 0xa72   :  { %1856 = vpow2.f32 %v1205_v21  ;;  %v1138_v43 = vadd.f32 %v2238_v26, %v972_v49 }
 0xa78   :  { %v1857_v22 = vpop.eup %1856 }
 0xa79   :  { %v1210_v23 = vsel %vm202_vm9, %v1857_v22, 0.0 }
 0xa7a   :  { %1211 = vadd.xlane.f32.xlu2 %v1210_v23 }
 0xaab   :  { %v1240_v27 = vpop.f32.mrf.mxu0 }
 0xaac   :  { %1747 = vmatmul.msk.f32.vlgmr.msra.gmra.mxu2 %vm150_vm8, %v1240_v27 }
 0xab3   :  { %v1330_v28 = vpop.f32.mrf.mxu0  ;;  %v1358_v31 = vpop.f32.mrf.mxu3 }
 0xab4   :  { %v1364_v32 = vsel %vm202_vm9, %v1358_v31, -inf  ;;  %v1361_v33 = vsel %vm202_vm9, %v1330_v28, -inf }
 0xab5   :  { %1365 = vmax.xlane.f32.xlu1 %v1364_v32  ;;  %1362 = vmax.xlane.f32.xlu0 %v1361_v33  ;;  %v1538_v32 = vld [vmem:[%s2402_s8 + $0x18] sm:$0xff]  ;;  %v1537_v33 = vld [vmem:[%s2402_s8 + $0x10] sm:$0xff] }
 0xace   :  { %1243 = vrot.lane.b32.xlu1 %v2043_v54, %s1922_s24  ;;  %s1666_s24 = sshll.u32 %s2408_s14, 4  ;;  %s1667_s24 = int_to_ptr.hbm [resolvable:$true] %s1666_s24 }
 0xaed   :  { %v1212_v42 = vpop.xlane.xlu2 %1211 }
 0xb28   :  { %v1366_v34 = vpop.xlane.xlu1 %1365  ;;  %v1363_v35 = vpop.xlane.xlu0 %1362 }
 0xb29   :  { %v1368_v36 = vsub.f32 %v1358_v31, %v1366_v34  ;;  %v1367_v37 = vsub.f32 %v1330_v28, %v1363_v35  ;;  %v1536_v34 = vld [vmem:[%s2402_s8 + $0x8] sm:$0xff]  ;;  %v1535_v35 = vld [vmem:[%s2402_s8] sm:$0xff] }
 0xb2b   :  { %v1371_v38 = vmul.f32 1.442695, %v1368_v36  ;;  %v1369_v39 = vmul.f32 1.442695, %v1367_v37 }
 0xb2d   :  { %1858 = vpow2.f32 %v1371_v38 }
 0xb2e   :  { %1860 = vpow2.f32 %v1369_v39  ;;  %v1589_v39 = vld [vmem:[%s2404_s10 + $0x78] sm:$0xff] }
 0xb2f   :  { %1862 = vrcp.f32 %v1212_v42  ;;  %v1297_v1 = vpop.f32.mrf.mxu2  ;;  %1590 = vmatpush.msrb.mxu2 %v1589_v39 }
 0xb30   :  { %v1303_v5 = vadd.f32 %v1297_v1, %v1137_v3  ;;  %v1579_v3 = vld [vmem:[%s2404_s10 + $0x28] sm:$0xff] }
 0xb33   :  { %v1859_v40 = vpop.eup %1858 }
 0xb34   :  { %v1861_v41 = vpop.eup %1860  ;;  %v1376_v44 = vsel %vm202_vm9, %v1859_v40, 0.0 }
 0xb35   :  { %1377 = vadd.xlane.f32.xlu2 %v1376_v44  ;;  %v1373_v45 = vsel %vm202_vm9, %v1861_v41, 0.0  ;;  %v1863_v46 = vpop.eup %1862 }
 0xb36   :  { %1374 = vadd.xlane.f32.xlu0 %v1373_v45  ;;  %v1216_v47 = vmul.f32 %v1863_v46, %v1857_v22  ;;  %v1586_v45 = vld [vmem:[%s2404_s10 + $0x60] sm:$0xff] }
 0xb40   :  { %v1244_v48 = vpop.permute.xlu1 %1243 }
 0xb41   :  { %1264 = vmatpush.msra.mxu1 %v1244_v48  ;;  %v1585_v48 = vld [vmem:[%s2404_s10 + $0x58] sm:$0xff] }
 0xb42   :  { %1744 = vmatmul.msk.f32.vlgmr.msra.gmra.mxu1 %vm202_vm9, %v1216_v47 }
 0xb4a   :  { %1383 = vrot.lane.b32.xlu0 %v2038_v53, %s1923_s26  ;;  %v1755_v53 = vld [vmem:[%s2398_s4 + $0x1c] sm:$0xf] }
 0xb4b   :  { %1756 = vmatpush.msk.msrb.mxu3 %vm416_vm10, %v1755_v53 }
 0xb4d   :  { %1409 = vrot.lane.b32.xlu2 %v2043_v54, %s1923_s26 }
 0xba8   :  { %v1378_v50 = vpop.xlane.xlu2 %1377 }
 0xba9   :  { %1864 = vrcp.f32 %v1378_v50  ;;  %v1375_v56 = vpop.xlane.xlu0 %1374 }
 0xbaa   :  { %1866 = vrcp.f32 %v1375_v56 }
 0xbaf   :  { %v1865_v51 = vpop.eup %1864 }
 0xbb0   :  { %v1382_v52 = vmul.f32 %v1865_v51, %v1859_v40  ;;  %v1410_v57 = vpop.permute.xlu2 %1409  ;;  %v1867_v59 = vpop.eup %1866  ;;  %v1588_v40 = vld [vmem:[%s2404_s10 + $0x70] sm:$0xff] }
 0xbb1   :  { %1430 = vmatpush.msrb.mxu0 %v1410_v57  ;;  %v1381_v60 = vmul.f32 %v1867_v59, %v1861_v41  ;;  %v1587_v41 = vld [vmem:[%s2404_s10 + $0x68] sm:$0xff]  ;;  %1591 = vmatpush.msrb.mxu2 %v1588_v40  ;;  %v1584_v51 = vld [vmem:[%s2404_s10 + $0x50] sm:$0xff]  ;;  %v1582_v57 = vld [vmem:[%s2404_s10 + $0x40] sm:$0xff] }
 0xbb2   :  { %1754 = vmatmul.msk.f32.vlgmr.msrb.gmra.mxu0 %vm202_vm9, %v1382_v52 }
 0xbb3   :  { %1592 = vmatpush.msrb.mxu2 %v1587_v41 }
 0xbb5   :  { %1593 = vmatpush.msrb.mxu2 %v1586_v45 }
 0xbb7   :  { %1594 = vmatpush.msrb.mxu2 %v1585_v48 }
 0xbb9   :  { %1595 = vmatpush.msrb.mxu2 %v1584_v51 }
 0xbbc   :  { %v1384_v61 = vpop.permute.xlu0 %1383 }
 0xbbd   :  { %1404 = vmatpush.msrb.mxu1 %v1384_v61  ;;  %v1581_v61 = vld [vmem:[%s2404_s10 + $0x38] sm:$0xff] }
 0xbbe   :  { %1753 = vmatmul.msk.f32.vlgmr.msrb.gmra.mxu1 %vm202_vm9, %v1381_v60 }
 0xbbf   :  { %v1266_v62 = vpop.f32.mrf.mxu1  ;;  %1561 = vmatpush.msra.mxu1 %v1538_v32 }
 0xbc0   :  { %1748 = vmatmul.msk.f32.gmra.mxu2 %vm150_vm8, %v1266_v62 }
 0xbc1   :  { %1562 = vmatpush.msra.mxu1 %v1537_v33 }
 0xbc3   :  { %1563 = vmatpush.msra.mxu1 %v1536_v34 }
 0xbc5   :  { %1564 = vmatpush.msra.mxu1 %v1535_v35 }
 0xc2f   :  { %v1432_v55 = vpop.f32.mrf.mxu0 }
 0xc3b   :  { %v1406_v54 = vpop.f32.mrf.mxu1 }
 0xc3c   :  { %1757 = vmatmul.msk.f32.vlgmr.msrb.gmra.mxu3 %vm150_vm8, %v1406_v54  ;;  %v1793_v54 = vld [vmem:[%s2400_s6] ss:$0 sm:$0xff]  ;;  %s1925_s6 = smov 128  }
 0xc43   :  { %v1300_v58 = vpop.f32.mrf.mxu2 }
 0xc44   :  { %1758 = vmatmul.msk.f32.gmra.mxu3 %vm150_vm8, %v1432_v55  ;;  %v1304_v13 = vadd.f32 %v1300_v58, %v1138_v43  ;;  %v1580_v55 = vld [vmem:[%s2404_s10 + $0x30] sm:$0xff] }
 0xcbf   :  { %v1463_v6 = vpop.f32.mrf.mxu3 }
 0xcc0   :  { %v1469_v11 = vadd.f32 %v1463_v6, %v1303_v5  ;;  %v1578_v6 = vld [vmem:[%s2404_s10 + $0x20] sm:$0xff] }
 0xcc2   :  { %v1471_v7 = vadd.f32 %v1872_v29, %v1469_v11 }
 0xcc4   :  { %v2274_v15 = vadd.f32 %v1792_v12, %v1471_v7 }
 0xcc6   :  { %v1481_v30 = vsel %vm52_vm0, %v2274_v15, 0.0 }
 0xcc7   :  { %1482 = vadd.xlane.f32.xlu1 %v1481_v30  ;;  %v1466_v14 = vpop.f32.mrf.mxu3  ;;  %v1575_v30 = vld [vmem:[%s2404_s10 + $0x8] sm:$0xff] }
 0xcc8   :  { %v1470_v16 = vadd.f32 %v1466_v14, %v1304_v13  ;;  %v1576_v13 = vld [vmem:[%s2404_s10 + $0x10] sm:$0xff]  ;;  %v1574_v14 = vld [vmem:[%s2404_s10] sm:$0xff] }
 0xcca   :  { %v1472_v17 = vadd.f32 %v1873_v8, %v1470_v16  ;;  %v1624_v16 = vld [vmem:[%s2406_s12 + $0x18] sm:$0xff]  ;;  %v1795_v8 = vld [vmem:[%s2403_s9] ss:$0 sm:$0xff] }
 0xccb   :  { %1647 = vmatpush.msra.mxu0 %v1624_v16 }
 0xccc   :  { %v2281_v18 = vadd.f32 %v1792_v12, %v1472_v17  ;;  %v1577_v12 = vld [vmem:[%s2404_s10 + $0x18] sm:$0xff] }
 0xcce   :  { %v1484_v19 = vsel %vm52_vm0, %v2281_v18, 0.0 }
 0xccf   :  { %1485 = vadd.xlane.f32.xlu0 %v1484_v19 }
 0xd3a   :  { %v1483_v20 = vpop.xlane.xlu1 %1482 }
 0xd3b   :  { %v1487_v21 = vmul.f32 %v1483_v20, %v2010_v10 }
 0xd3d   :  { %v1489_v22 = vsub.f32 %v2274_v15, %v1487_v21 }
 0xd3f   :  { %v1491_v23 = vmul.f32 %v1489_v22, %v1489_v22 }
 0xd41   :  { %v1493_v24 = vsel %vm52_vm0, %v1491_v23, 0.0 }
 0xd42   :  { %1494 = vadd.xlane.f32.xlu2 %v1493_v24  ;;  %v1486_v25 = vpop.xlane.xlu0 %1485  ;;  %v1623_v24 = vld [vmem:[%s2406_s12 + $0x10] sm:$0xff] }
 0xd43   :  { %v1488_v26 = vmul.f32 %v1486_v25, %v2010_v10  ;;  %1648 = vmatpush.msra.mxu0 %v1623_v24  ;;  %v1622_v25 = vld [vmem:[%s2406_s12 + $0x8] sm:$0xff] }
 0xd45   :  { %v2290_v27 = vsub.f32 %v2281_v18, %v1488_v26  ;;  %1649 = vmatpush.msra.mxu0 %v1622_v25  ;;  %v1621_v26 = vld [vmem:[%s2406_s12] sm:$0xff] }
 0xd47   :  { %v1492_v28 = vmul.f32 %v2290_v27, %v2290_v27  ;;  %1650 = vmatpush.msra.mxu0 %v1621_v26 }
 0xd49   :  { %v1496_v31 = vsel %vm52_vm0, %v1492_v28, 0.0 }
 0xd4a   :  { %1497 = vadd.xlane.f32.xlu1 %v1496_v31 }
 0xdb5   :  { %v1495_v36 = vpop.xlane.xlu2 %1494 }
 0xdb6   :  { %v1499_v37 = vmul.f32 %v1495_v36, %v2010_v10  ;;  %v1797_v36 = vld [vmem:[%s2407_s13] ss:$0 sm:$0xff] }
 0xdb8   :  { %v1501_v38 = vadd.f32 1e-05, %v1499_v37 }
 0xdba   :  { %1868 = vrsqrt.f32 %v1501_v38  ;;  %vm1509_vm12 = vweird.f32 %v1501_v38 }
 0xdbd   :  { %v1498_v42 = vpop.xlane.xlu1 %1497 }
 0xdbe   :  { %v1500_v44 = vmul.f32 %v1498_v42, %v2010_v10  ;;  %v1583_v10 = vld [vmem:[%s2404_s10 + $0x48] sm:$0xff] }
 0xdbf   :  { %1596 = vmatpush.msrb.mxu2 %v1583_v10 }
 0xdc0   :  { %v1869_v46 = vpop.eup %1868  ;;  %v1502_v47 = vadd.f32 1e-05, %v1500_v44 }
 0xdc1   :  { %v1504_v50 = vmul.f32 %v1869_v46, %v1501_v38  ;;  %vm1510_vm11 = vweird.f32 %v1869_v46  ;;  %1597 = vmatpush.msrb.mxu2 %v1582_v57 }
 0xdc2   :  { %1870 = vrsqrt.f32 %v1502_v47  ;;  %vm1511_vm13 = vmor %vm1509_vm12, %vm1510_vm11  ;;  %vm1519_vm15 = vweird.f32 %v1502_v47 }
 0xdc3   :  { %v1505_v52 = vmul.f32 %v1869_v46, %v1504_v50  ;;  %1598 = vmatpush.msrb.mxu2 %v1581_v61 }
 0xdc5   :  { %v1506_v56 = vmul.f32 0.5, %v1505_v52  ;;  %1599 = vmatpush.msrb.mxu2 %v1580_v55 }
 0xdc7   :  { %v1507_v59 = vsub.f32 1.5, %v1506_v56  ;;  %1600 = vmatpush.msrb.mxu2 %v1579_v3 }
 0xdc8   :  { %v1871_v60 = vpop.eup %1870 }
 0xdc9   :  { %v1508_v62 = vmul.f32 %v1869_v46, %v1507_v59  ;;  %v1514_v53 = vmul.f32 %v1871_v60, %v1502_v47  ;;  %vm1520_vm14 = vweird.f32 %v1871_v60  ;;  %1601 = vmatpush.msrb.mxu2 %v1578_v6 }
 0xdca   :  { %vm1521_vm1 = vmor %vm1519_vm15, %vm1520_vm14 }
 0xdcb   :  { %v1512_v63 = vsel %vm1511_vm13, %v1869_v46, %v1508_v62  ;;  %v1515_v0 = vmul.f32 %v1871_v60, %v1514_v53  ;;  %1602 = vmatpush.msrb.mxu2 %v1577_v12 }
 0xdcc   :  { %v1523_v1 = vmul.f32 %v1512_v63, %v1489_v22 }
 0xdcd   :  { %v1516_v4 = vmul.f32 0.5, %v1515_v0  ;;  %1603 = vmatpush.msrb.mxu2 %v1576_v13 }
 0xdce   :  { %v1528_v5 = vmul.f32 %v1793_v54, %v1523_v1 }
 0xdcf   :  { %v1517_v9 = vsub.f32 1.5, %v1516_v4  ;;  %1604 = vmatpush.msrb.mxu2 %v1575_v30 }
 0xdd0   :  { %v1533_v11 = vadd.f32 %v1794_v2, %v1528_v5 }
 0xdd1   :  { %v1518_v49 = vmul.f32 %v1871_v60, %v1517_v9  ;;  %1605 = vmatpush.msrb.mxu2 %v1574_v14 }
 0xdd2   :  { %1759 = vmatmul.msk.f32.vlgmr.msra.gmra.mxu1 %vm52_vm0, %v1533_v11 }
 0xdd3   :  { %v1522_v29 = vsel %vm1521_vm1, %v1871_v60, %v1518_v49 }
 0xdd4   :  { %v1524_v7 = vmul.f32 %v1522_v29, %v2290_v27  ;;  %v1796_v27 = vld [vmem:[%s2405_s11] ss:$0 sm:$0xff]  ;;  %s1924_s11 = smov [#allocation2]  }
 0xdd5   :  { %s1664_s12 = sshll.u32 %s1924_s11, 4  ;;  %s1665_s12 = int_to_ptr.vmem [resolvable:$true] %s1664_s12 }
 0xdd6   :  { %v1529_v58 = vmul.f32 %v1793_v54, %v1524_v7 }
 0xdd8   :  { %v1534_v43 = vadd.f32 %v1794_v2, %v1529_v58 }
 0xdda   :  { %1760 = vmatmul.msk.f32.gmra.mxu1 %vm52_vm0, %v1534_v43 }
 0xe4f   :  { %v1566_v17 = vpop.f32.mrf.mxu1 }
 0xe50   :  { %v1567_v19 = vadd.f32 %v1795_v8, %v1566_v17 }
 0xe52   :  { %v1572_v20 = vmax.f32 %v1567_v19, 0.0 }
 0xe54   :  { %1606 = vmatmul.f32.vlgmr.msrb.gmra.mxu2 %v1572_v20 }
 0xe57   :  { %v1569_v21 = vpop.f32.mrf.mxu1 }
 0xe58   :  { %v1570_v22 = vadd.f32 %v1795_v8, %v1569_v21 }
 0xe5a   :  { %v1573_v23 = vmax.f32 %v1570_v22, 0.0 }
 0xe5c   :  { %1609 = vmatmul.f32.gmra.mxu2 %v1573_v23 }
 0xed7   :  { %v1607_v28 = vpop.f32.mrf.mxu2 }
 0xed8   :  { %v1613_v31 = vadd.f32 %v1607_v28, %v2274_v15 }
 0xeda   :  { %v1619_v32 = vadd.f32 %v1796_v27, %v1613_v31 }
 0xedc   :  { %1761 = vmatmul.msk.f32.vlgmr.msra.gmra.mxu0 %vm52_vm0, %v1619_v32 }
 0xedf   :  { %v1610_v33 = vpop.f32.mrf.mxu2 }
 0xee0   :  { %v1614_v34 = vadd.f32 %v1610_v33, %v2281_v18 }
 0xee2   :  { %v1620_v35 = vadd.f32 %v1796_v27, %v1614_v34 }
 0xee4   :  { %1762 = vmatmul.msk.f32.gmra.mxu0 %vm52_vm0, %v1620_v35 }
 0xf59   :  { %v1652_v37 = vpop.f32.mrf.mxu0 }
 0xf5a   :  { %v1653_v38 = vadd.f32 %v1797_v36, %v1652_v37 }
 0xf5c   :  { %1658 = vst [vmem:[#allocation2] sm:$0xff] %v1653_v38 }
 0xf61   :  { %v1655_v15 = vpop.f32.mrf.mxu0 }
 0xf62   :  { %v1656_v18 = vadd.f32 %v1797_v36, %v1655_v15 }
 0xf64   :  { %1659 = vst [vmem:[#allocation2 + $0x8] sm:$0xff] %v1656_v18 }
 0xf65   :  { %1672 = dma.vmem_to_hbm [thread:$0]  %s1665_s12, 256, %s1667_s24, [#allocation3], %s1925_s6, %s1925_s6, %s1926_s3  }
 0xf66   :  { %1898 = dma.done.wait [#allocation3], 256  }
 0xf67   :  { %1899 = vsyncadd [#allocation3], 4294967040 }
 0xf68   :  { %1677 = vsyncpa [#allocation3], 1 }

</bundles_post_ra>
